<compile_context>
chip_gen: v5e
topology: v5e:2x2
jax: 0.10.0
libtpu: 0.0.40
codegen_flags: <defaults>
</compile_context>

<pallas_src>
import functools

import jax
import jax.numpy as jnp
from jax import lax
from jax.experimental import pallas as pl
from jax.experimental.pallas import tpu as pltpu


# ----------------------------------------------------------------------------
# Fused "nearest-2x upsample + 3x3 conv" kernel.  One grid step = one batch elem.
#
#   x_ref : (1, Cin, H, W)        original-resolution input (NCHW slice)
#   w_ref : (4*Cout, 9*Cin)       phase-mixed effective weights (built in wrapper)
#   b_ref : (4*Cout, 1)           bias replicated per phase
#   o_ref : (1, 4*Cout, H*W)      rows ordered (a, b, cout); lane axis = H*W
#   pad_ref (scratch, VMEM): (Cin, H+2, W+2)  zero-padded input
# ----------------------------------------------------------------------------
def upsample_conv_kernel(x_ref, w_ref, b_ref, o_ref, pad_ref, *, Cin, Cout, H, W):
    # Fold the zero padding into the kernel: zero the halo, write the interior.
    pad_ref[...] = jnp.zeros_like(pad_ref)
    pad_ref[:, 1:H + 1, 1:W + 1] = x_ref[0]

    # im2col over the 9 shifted windows of the LOW-RES padded input.
    cols = []
    for dy in range(3):
        for dx in range(3):
            win = pad_ref[:, dy:dy + H, dx:dx + W]          # (Cin, H, W)
            cols.append(win.reshape(Cin, H * W))
    patches = jnp.concatenate(cols, axis=0)                 # (9*Cin, H*W)

    # Single MXU matmul, contraction 9*Cin, output lane-dense on H*W.
    y = jnp.dot(w_ref[...], patches, preferred_element_type=jnp.float32)
    y = y + b_ref[...]                                      # broadcast (4*Cout, 1)
    o_ref[0] = y.astype(o_ref.dtype)


def upsample_forward(x, w_hwio, bias, *, with_conv=True):
    """x: (N, Cin, H, W) NCHW.  w_hwio: (3, 3, Cin, Cout).  bias: (Cout,)."""
    N, Cin, H, W = x.shape

    if not with_conv:
        # Pure nearest-2x upsample: a layout-only op, leave to XLA.
        xu = jnp.broadcast_to(x[:, :, :, None, :, None], (N, Cin, H, 2, W, 2))
        return xu.reshape(N, Cin, 2 * H, 2 * W)

    Cout = w_hwio.shape[-1]

    # Phase-mixing matrices A[a, dy, ky]: fold nearest-2x upsample into the weights.
    #   a=0: kernel row 0 -> window row 0 (orig i-1); rows 1,2 -> window row 1 (orig i)
    #   a=1: kernel rows 0,1 -> window row 1 (orig i); row 2 -> window row 2 (orig i+1)
    A = jnp.array(
        [[[1, 0, 0], [0, 1, 1], [0, 0, 0]],
         [[0, 0, 0], [1, 1, 0], [0, 0, 1]]], dtype=jnp.float32)

    w = w_hwio.astype(jnp.float32)
    # w_eff[a, b, co, dy, dx, ci] = sum_{ky,kx} A[a,dy,ky] A[b,dx,kx] w[ky,kx,ci,co]
    w_eff = jnp.einsum('apk,bql,klic->abcpqi', A, A, w)
    w_mat = w_eff.reshape(4 * Cout, 9 * Cin)                         # (4*Cout, 9*Cin)
    b_mat = jnp.tile(bias.astype(jnp.float32), 4).reshape(4 * Cout, 1)

    kern = functools.partial(upsample_conv_kernel, Cin=Cin, Cout=Cout, H=H, W=W)

    flops = 2 * N * (4 * Cout) * (9 * Cin) * (H * W)
    bytes_accessed = 4 * (x.size + w_mat.size + b_mat.size + N * 4 * Cout * H * W)

    y = pl.pallas_call(
        kern,
        out_shape=jax.ShapeDtypeStruct((N, 4 * Cout, H * W), jnp.float32),
        grid=(N,),
        in_specs=[
            pl.BlockSpec((1, Cin, H, W), lambda n: (n, 0, 0, 0)),
            pl.BlockSpec((4 * Cout, 9 * Cin), lambda n: (0, 0)),
            pl.BlockSpec((4 * Cout, 1), lambda n: (0, 0)),
        ],
        out_specs=pl.BlockSpec((1, 4 * Cout, H * W), lambda n: (n, 0, 0)),
        scratch_shapes=[pltpu.VMEM((Cin, H + 2, W + 2), jnp.float32)],
        compiler_params=pltpu.CompilerParams(dimension_semantics=("parallel",)),
        cost_estimate=pl.CostEstimate(flops=flops, transcendentals=0,
                                      bytes_accessed=bytes_accessed),
    )(x.astype(jnp.float32), w_mat, b_mat)

    # Un-interleave the 4 sub-pixel phases: (N, (a,b,co), i*W+j) -> (N, Cout, 2H, 2W).
    y = y.reshape(N, 2, 2, Cout, H, W)
    y = jnp.transpose(y, (0, 3, 4, 1, 5, 2)).reshape(N, Cout, 2 * H, 2 * W)
    return y.astype(x.dtype)


# ----------------------------------------------------------------------------
# Pure-JAX reference (upsample-then-conv, as PyTorch does it) for correctness.
# ----------------------------------------------------------------------------
def upsample_forward_ref(x, w_hwio, bias, *, with_conv=True):
    xu = jnp.repeat(jnp.repeat(x, 2, axis=2), 2, axis=3)
    if not with_conv:
        return xu
    out = lax.conv_general_dilated(
        xu, w_hwio, window_strides=(1, 1), padding='SAME',
        dimension_numbers=('NCHW', 'HWIO', 'NCHW'))
    return out + bias[None, :, None, None]


if __name__ == "__main__":
    # Upsample(in_channels=4, with_conv=True) on a (2, 4, 16, 16) input.
    N, C, H, W = 2, 4, 16, 16
    key = jax.random.PRNGKey(0)
    kx, kw, kb = jax.random.split(key, 3)

    x = jax.random.normal(kx, (N, C, H, W), jnp.float32)
    fan_in = 3 * 3 * C
    bound = fan_in ** -0.5
    w = jax.random.uniform(kw, (3, 3, C, C), jnp.float32, -bound, bound)   # HWIO
    b = jax.random.uniform(kb, (C,), jnp.float32, -bound, bound)

    fwd = jax.jit(functools.partial(upsample_forward, with_conv=True))
    out = fwd(x, w, b)
    jax.block_until_ready(out)

    assert out.shape == (N, C, 2 * H, 2 * W), out.shape
    assert bool(jnp.isfinite(out).all())

    ref = upsample_forward_ref(x, w, b, with_conv=True)
    max_err = float(jnp.max(jnp.abs(out - ref)))
    assert jnp.allclose(out, ref, atol=1e-3, rtol=1e-3), max_err

    print("KERNEL_OK")
</pallas_src>

<mosaic_0001>
module attributes {stable_mosaic.version = 11 : i64} {
  func.func @upsample_conv_kernel(%arg0: i32, %arg1: memref<1x4x16x16xf32, #tpu.memory_space<vmem>>, %arg2: memref<16x36xf32, #tpu.memory_space<vmem>>, %arg3: memref<16x1xf32, #tpu.memory_space<vmem>>, %arg4: memref<1x16x256xf32, #tpu.memory_space<vmem>>, %arg5: memref<4x18x18xf32, #tpu.memory_space<vmem>>) attributes {dimension_semantics = [#tpu.dimension_semantics<parallel>], iteration_bounds = array<i64: 2>, scalar_prefetch = 0 : i64, scratch_operands = 1 : i64, tpu.core_type = #tpu.core_type<tc>, window_params = [{transform_indices = @transform_0, window_bounds = array<i64: 1, 4, 16, 16>}, {pipeline_mode = #tpu.pipeline_mode<synchronous>, transform_indices = @transform_1, window_bounds = array<i64: 16, 36>}, {pipeline_mode = #tpu.pipeline_mode<synchronous>, transform_indices = @transform_2, window_bounds = array<i64: 16, 1>}, {transform_indices = @transform_3, window_bounds = array<i64: 1, 16, 256>}]} {
    %cst = arith.constant 0.000000e+00 : f32
    %0 = vector.broadcast %cst : f32 to vector<4x18x18xf32>
    %c0 = arith.constant 0 : index
    %c0_0 = arith.constant 0 : index
    %c0_1 = arith.constant 0 : index
    %1 = vector.load %arg5[%c0, %c0_0, %c0_1] : memref<4x18x18xf32, #tpu.memory_space<vmem>>, vector<4x18x18xf32>
    tpu.vector_store %arg5[%c0, %c0_0, %c0_1], %0 {strides = array<i32>} : memref<4x18x18xf32, #tpu.memory_space<vmem>>, vector<4x18x18xf32>,
    %c0_2 = arith.constant 0 : index
    %c0_3 = arith.constant 0 : index
    %c0_4 = arith.constant 0 : index
    %c0_5 = arith.constant 0 : index
    %2 = vector.load %arg1[%c0_2, %c0_3, %c0_4, %c0_5] : memref<1x4x16x16xf32, #tpu.memory_space<vmem>>, vector<1x4x16x16xf32>
    %3 = vector.shape_cast %2 : vector<1x4x16x16xf32> to vector<4x16x16xf32>
    %c0_6 = arith.constant 0 : index
    %c1 = arith.constant 1 : index
    %c1_7 = arith.constant 1 : index
    %4 = vector.load %arg5[%c0_6, %c1, %c1_7] : memref<4x18x18xf32, #tpu.memory_space<vmem>>, vector<4x16x16xf32>
    tpu.vector_store %arg5[%c0_6, %c1, %c1_7], %3 {strides = array<i32>} : memref<4x18x18xf32, #tpu.memory_space<vmem>>, vector<4x16x16xf32>,
    %c0_8 = arith.constant 0 : index
    %c0_9 = arith.constant 0 : index
    %c0_10 = arith.constant 0 : index
    %5 = vector.load %arg5[%c0_8, %c0_9, %c0_10] : memref<4x18x18xf32, #tpu.memory_space<vmem>>, vector<4x16x16xf32>
    %6 = vector.shape_cast %5 : vector<4x16x16xf32> to vector<4x256xf32>
    %c0_11 = arith.constant 0 : index
    %c0_12 = arith.constant 0 : index
    %c1_13 = arith.constant 1 : index
    %7 = vector.load %arg5[%c0_11, %c0_12, %c1_13] : memref<4x18x18xf32, #tpu.memory_space<vmem>>, vector<4x16x16xf32>
    %8 = vector.shape_cast %7 : vector<4x16x16xf32> to vector<4x256xf32>
    %c0_14 = arith.constant 0 : index
    %c0_15 = arith.constant 0 : index
    %c2 = arith.constant 2 : index
    %9 = vector.load %arg5[%c0_14, %c0_15, %c2] : memref<4x18x18xf32, #tpu.memory_space<vmem>>, vector<4x16x16xf32>
    %10 = vector.shape_cast %9 : vector<4x16x16xf32> to vector<4x256xf32>
    %c0_16 = arith.constant 0 : index
    %c1_17 = arith.constant 1 : index
    %c0_18 = arith.constant 0 : index
    %11 = vector.load %arg5[%c0_16, %c1_17, %c0_18] : memref<4x18x18xf32, #tpu.memory_space<vmem>>, vector<4x16x16xf32>
    %12 = vector.shape_cast %11 : vector<4x16x16xf32> to vector<4x256xf32>
    %c0_19 = arith.constant 0 : index
    %c1_20 = arith.constant 1 : index
    %c1_21 = arith.constant 1 : index
    %13 = vector.load %arg5[%c0_19, %c1_20, %c1_21] : memref<4x18x18xf32, #tpu.memory_space<vmem>>, vector<4x16x16xf32>
    %14 = vector.shape_cast %13 : vector<4x16x16xf32> to vector<4x256xf32>
    %c0_22 = arith.constant 0 : index
    %c1_23 = arith.constant 1 : index
    %c2_24 = arith.constant 2 : index
    %15 = vector.load %arg5[%c0_22, %c1_23, %c2_24] : memref<4x18x18xf32, #tpu.memory_space<vmem>>, vector<4x16x16xf32>
    %16 = vector.shape_cast %15 : vector<4x16x16xf32> to vector<4x256xf32>
    %c0_25 = arith.constant 0 : index
    %c2_26 = arith.constant 2 : index
    %c0_27 = arith.constant 0 : index
    %17 = vector.load %arg5[%c0_25, %c2_26, %c0_27] : memref<4x18x18xf32, #tpu.memory_space<vmem>>, vector<4x16x16xf32>
    %18 = vector.shape_cast %17 : vector<4x16x16xf32> to vector<4x256xf32>
    %c0_28 = arith.constant 0 : index
    %c2_29 = arith.constant 2 : index
    %c1_30 = arith.constant 1 : index
    %19 = vector.load %arg5[%c0_28, %c2_29, %c1_30] : memref<4x18x18xf32, #tpu.memory_space<vmem>>, vector<4x16x16xf32>
    %20 = vector.shape_cast %19 : vector<4x16x16xf32> to vector<4x256xf32>
    %c0_31 = arith.constant 0 : index
    %c2_32 = arith.constant 2 : index
    %c2_33 = arith.constant 2 : index
    %21 = vector.load %arg5[%c0_31, %c2_32, %c2_33] : memref<4x18x18xf32, #tpu.memory_space<vmem>>, vector<4x16x16xf32>
    %22 = vector.shape_cast %21 : vector<4x16x16xf32> to vector<4x256xf32>
    %23 = tpu.concatenate %6, %8, %10, %12, %14, %16, %18, %20, %22 in 0 : vector<4x256xf32>, vector<4x256xf32>, vector<4x256xf32>, vector<4x256xf32>, vector<4x256xf32>, vector<4x256xf32>, vector<4x256xf32>, vector<4x256xf32>, vector<4x256xf32> -> vector<36x256xf32>
    %c0_34 = arith.constant 0 : index
    %c0_35 = arith.constant 0 : index
    %24 = vector.load %arg2[%c0_34, %c0_35] : memref<16x36xf32, #tpu.memory_space<vmem>>, vector<16x36xf32>
    %cst_36 = arith.constant dense<0.000000e+00> : vector<16x256xf32>
    %25 = tpu.matmul %24, %23, %cst_36 {dimension_numbers = #tpu.dot_dimension_numbers<[1], [0], [0], [1], [0, 0, 1, 1], [], []>} : vector<16x36xf32>, vector<36x256xf32>, vector<16x256xf32> -> vector<16x256xf32>
    %c0_37 = arith.constant 0 : index
    %c0_38 = arith.constant 0 : index
    %26 = vector.load %arg3[%c0_37, %c0_38] : memref<16x1xf32, #tpu.memory_space<vmem>>, vector<16x1xf32>
    %27 = vector.broadcast %26 : vector<16x1xf32> to vector<16x256xf32>
    %28 = arith.addf %25, %27 : vector<16x256xf32>
    %c0_39 = arith.constant 0 : index
    %c0_40 = arith.constant 0 : index
    %c0_41 = arith.constant 0 : index
    %29 = vector.load %arg4[%c0_39, %c0_40, %c0_41] : memref<1x16x256xf32, #tpu.memory_space<vmem>>, vector<1x16x256xf32>
    %30 = vector.shape_cast %29 : vector<1x16x256xf32> to vector<16x256xf32>
    %31 = vector.shape_cast %28 : vector<16x256xf32> to vector<1x16x256xf32>
    tpu.vector_store %arg4[%c0_39, %c0_40, %c0_41], %31 {strides = array<i32>} : memref<1x16x256xf32, #tpu.memory_space<vmem>>, vector<1x16x256xf32>,
    return
  }
  func.func @transform_0(%arg0: i32) -> (i32, i32, i32, i32) {
    %c0_i32 = arith.constant 0 : i32
    %c0_i32_0 = arith.constant 0 : i32
    %c0_i32_1 = arith.constant 0 : i32
    %c0_i32_2 = arith.constant 0 : i32
    return %arg0, %c0_i32, %c0_i32_0, %c0_i32_1 : i32, i32, i32, i32
  }
  func.func @transform_1(%arg0: i32) -> (i32, i32) {
    %c0_i32 = arith.constant 0 : i32
    %c0_i32_0 = arith.constant 0 : i32
    %c0_i32_1 = arith.constant 0 : i32
    return %c0_i32, %c0_i32_0 : i32, i32
  }
  func.func @transform_2(%arg0: i32) -> (i32, i32) {
    %c0_i32 = arith.constant 0 : i32
    %c0_i32_0 = arith.constant 0 : i32
    %c0_i32_1 = arith.constant 0 : i32
    return %c0_i32, %c0_i32_0 : i32, i32
  }
  func.func @transform_3(%arg0: i32) -> (i32, i32, i32) {
    %c0_i32 = arith.constant 0 : i32
    %c0_i32_0 = arith.constant 0 : i32
    %c0_i32_1 = arith.constant 0 : i32
    return %arg0, %c0_i32, %c0_i32_0 : i32, i32, i32
  }
}

</mosaic_0001>

<bundles_post_ra>
// kernel: tile.0
= control target key start
LH: loop header
LB: loop body
LE: loop exit
PB: predicated region body
PF: predicated region fallthrough
CT: control target
= control target key end

     0   :  { %s34_s8 = smov 125   ;;  %s35_s9 = smov 126   ;;  %vm7_vm0 = vcmask 7168   ;;  %s61_s0 = inlined_call_operand.vmem [shape: f32[4,4], index: 0, kind: input, shape index: {}]   ;;  %s62_s1 = inlined_call_operand.vmem [shape: f32[16,1], index: 1, kind: output, shape index: {}]  }
   0x1   :  { %v4_v0 = vld [vmem:[%s61_s0] sm:$0xf]  ;;  %s33_s0 = smov 127  }
   0x2   :  { %5 = vst [vmem:[#allocation0] sm:$0xf] %v4_v0 }
   0x9   :  { %v9_v1 = vld [vmem:[#allocation0] sm:$0xf]  }
   0xa   :  { %v21_v2 = vld [vmem:[#allocation0] sm:$0xf]   ;;  %10 = vrot.lane.b32.xlu0 %v9_v1, %s33_s0 }
   0xb   :  { %22 = vrot.lane.b32.xlu1 %v21_v2, %s34_s8  ;;  %v15_v3 = vld [vmem:[#allocation0] sm:$0xf]  }
   0xc   :  { %v6_v4 = vld [vmem:[#allocation0] sm:$0xf]  }
   0xd   :  { %8 = vst.msk [vmem:[%s62_s1] ss:$4 sm:$0xf] %vm7_vm0, %v6_v4  }
  0x12   :  { %16 = vrot.lane.b32.xlu0 %v15_v3, %s35_s9 }
  0x7c   :  { %v11_v5 = vpop.permute.xlu0 %10  }
  0x7d   :  { %v23_v6 = vpop.permute.xlu1 %22   ;;  %27 = vst.msk [vmem:[%s62_s1 + $0x1] ss:$4 sm:$0xf] %vm7_vm0, %v11_v5  }
  0x7e   :  { %29 = vst.msk [vmem:[%s62_s1 + $0x3] ss:$4 sm:$0xf] %vm7_vm0, %v23_v6  }
  0x84   :  { %v17_v7 = vpop.permute.xlu0 %16  }
  0x85   :  { %28 = vst.msk [vmem:[%s62_s1 + $0x2] ss:$4 sm:$0xf] %vm7_vm0, %v17_v7  }

// kernel: tile.8
= control target key start
LH: loop header
LB: loop body
LE: loop exit
PB: predicated region body
PF: predicated region fallthrough
CT: control target
= control target key end

     0   :  { %s22_s0 = inlined_call_operand.vmem [shape: f32[4], index: 0, kind: input, shape index: {}]   ;;  %s23_s1 = inlined_call_operand.vmem [shape: f32[4,4], index: 1, kind: output, shape index: {}]  }
   0x1   :  { %v4_v0 = vld [vmem:[%s22_s0] ss:$0 sm:$0xff] }
   0x2   :  { %5 = vst [vmem:[%s23_s1] sm:$0xf] %v4_v0 }

// kernel: upsample_forward.1
= control target key start
LH: loop header
LB: loop body
LE: loop exit
PB: predicated region body
PF: predicated region fallthrough
CT: control target
= control target key end

     0   :  { %s2713_s12 = smov 0   ;;  %s4420_s0 = inlined_call_operand.vmem [shape: f32[2,4,16,16], index: 0, kind: input, shape index: {}]   ;;  %s4421_s1 = inlined_call_operand.vmem [shape: f32[16,36], index: 1, kind: input, shape index: {}]   ;;  %s4422_s2 = inlined_call_operand.vmem [shape: f32[16,1], index: 2, kind: input, shape index: {}]   ;;  %s4423_s3 = inlined_call_operand.vmem [shape: f32[2,16,256], index: 3, kind: output, shape index: {}]  }
   0x1 LB: > { %s2237_s13 = sadd.s32 4294967295, %s2677_s12   ;;  %p2241_p0 = scmp.ge.s32.totalorder %s2677_s12, 1  ;;  %s2677_s12 = sphi %s2713_s12, %s13_s12  }
   0x2   : > { %p137_p1 = scmp.lt.s32.totalorder %s2677_s12, 3 }
   0x4   : > { %p138_p2 = pnand %p2241_p0, %p137_p1 }
   0x6   : > { %141 = sbr.rel (%p138_p2) target bundleno = 707 (0x2c3), region = 32 }
   0xb   : > { %p161_p3 = scmp.lt.s32.totalorder %s2237_s13, 1  ;;  %vm171_vm0 = vcmask 146432   ;;  %v2679_v0 = vmov 0.0   ;;  %s2680_s18 = smov 1   ;;  %vm174_vm1 = vcmask 140288   ;;  %vm225_vm2 = vcmask 138248  }
   0xc   : > { %179 = vst.msk [vmem:[#allocation2 + $0x30] sm:$0xff] %vm171_vm0, %v2679_v0  ;;  %s2681_s19 = smov 127   ;;  %vm243_vm3 = vcmask 1047556   ;;  %v2682_v28 = vmov 1983009808   ;;  %s2683_s20 = smov 126  }
   0xd   : > { %s4551_s13 = smov (!%p161_p3, %s2237_s13), 1  ;;  %180 = vst.msk [vmem:[#allocation2 + $0x38] sm:$0xff] %vm171_vm0, %v2679_v0  ;;  %v248_v29 = vunpack.c.l.s4 %v2682_v28  ;;  %v2684_v42 = vmov 1934713408   ;;  %s2685_s21 = smov 96   ;;  %vm411_vm4 = vcmask 130048  }
   0xe   : > { %172 = vst.msk [vmem:[#allocation2] sm:$0xff] %vm171_vm0, %v2679_v0  ;;  %s2254_s14 = sshll.u32 %s4551_s13, 6  ;;  %v272_v43 = vunpack.c.l.s4 %v2684_v42  ;;  %s2686_s22 = smov 64   ;;  %vm413_vm5 = vcmask 261120   ;;  %vm415_vm6 = vcmask 392192   ;;  %vm417_vm7 = vcmask 523264  }
   0xf   : > { %173 = vst.msk [vmem:[#allocation2 + $0x8] sm:$0xff] %vm171_vm0, %v2679_v0  ;;  %s165_s17 = scalar_lea.vmem %s4420_s0, %s2254_s14  ;;  %v2752_v34 = vunpack.c.0.s8 %v248_v29  ;;  %s2687_s23 = smov 32   ;;  %vm419_vm8 = vcmask 654336   ;;  %vm421_vm9 = vcmask 785408   ;;  %vm423_vm10 = vcmask 916480  }
  0x10   : > { %176 = vst.msk [vmem:[#allocation2 + $0x18] sm:$0xff] %vm171_vm0, %v2679_v0  ;;  %v187_v1 = vld [vmem:[%s165_s17 + $0x10] sm:$0xff]  ;;  %v185_v2 = vld [vmem:[%s165_s17] sm:$0xff]  ;;  %v188_v4 = vld [vmem:[%s165_s17 + $0x18] sm:$0xff]  ;;  %v2774_v54 = vunpack.c.0.s8 %v272_v43  ;;  %s2688_s24 = smov 48   ;;  %s2689_s25 = smov 16  }
  0x11   : > { %177 = vst.msk [vmem:[#allocation2 + $0x20] sm:$0xff] %vm171_vm0, %v2679_v0  ;;  %205 = vrot.lane.b32.xlu1 %v187_v1, %s2680_s18  ;;  %201 = vrot.lane.b32.xlu0 %v185_v2, %s2680_s18  ;;  %v189_v3 = vld [vmem:[%s165_s17 + $0x20] sm:$0xff]  ;;  %v186_v5 = vld [vmem:[%s165_s17 + $0x8] sm:$0xff]  ;;  %s2690_s26 = smov 112   ;;  %s2691_s27 = smov 80   ;;  %vm2096_vm11 = vcmask 1043456  }
  0x12   : > { %182 = vst.msk [vmem:[#allocation2 + $0x48] sm:$0xff] %vm171_vm0, %v2679_v0  ;;  %209 = vrot.lane.b32.xlu2 %v189_v3, %s2680_s18  ;;  %v190_v6 = vld [vmem:[%s165_s17 + $0x28] sm:$0xff]  ;;  %v192_v7 = vld [vmem:[%s165_s17 + $0x38] sm:$0xff]  ;;  %v191_v8 = vld [vmem:[%s165_s17 + $0x30] sm:$0xff]  ;;  %vm2119_vm12 = vcmask 293888   ;;  %s2255_s9 = sshll.u32 %s4551_s13, 5 }
  0x13   : > { %183 = vst.msk [vmem:[#allocation2 + $0x50] sm:$0xff] %vm171_vm0, %v2679_v0  ;;  %s170_s14 = scalar_lea.vmem %s4423_s3, %s2255_s9 }
  0x14   : > { %181 = vst.msk [vmem:[#allocation2 + $0x40] sm:$0x3] %vm174_vm1, %v2679_v0 }
  0x15   : > { %175 = vst.msk [vmem:[#allocation2 + $0x10] sm:$0x3] %vm174_vm1, %v2679_v0 }
  0x16   : > { %178 = vst.msk [vmem:[#allocation2 + $0x28] sm:$0x3] %vm174_vm1, %v2679_v0 }
  0x17   : > { %184 = vst.msk [vmem:[#allocation2 + $0x58] sm:$0x3] %vm174_vm1, %v2679_v0 }
  0x19   : > { %207 = vrot.lane.b32.xlu1 %v188_v4, %s2680_s18  ;;  %203 = vrot.lane.b32.xlu0 %v186_v5, %s2680_s18 }
  0x1a   : > { %211 = vrot.lane.b32.xlu2 %v190_v6, %s2680_s18 }
  0x21   : > { %215 = vrot.lane.b32.xlu1 %v192_v7, %s2680_s18  ;;  %213 = vrot.lane.b32.xlu0 %v191_v8, %s2680_s18 }
  0x6c   : > { %v210_v9 = vpop.permute.xlu2 %209 }
  0x6d   : > { %230 = vst.msk [vmem:[#allocation2 + $0x31] sm:$0xff] %vm225_vm2, %v210_v9 }
  0x74   : > { %v212_v10 = vpop.permute.xlu2 %211  ;;  %v238_v11 = vld [vmem:[#allocation2 + $0x30] sm:$0xff] }
  0x75   : > { %231 = vst.msk [vmem:[#allocation2 + $0x39] sm:$0xff] %vm225_vm2, %v212_v10  ;;  %v242_v16 = vrot.slane %v238_v11, 4  ;;  %v2767_v52 = vld [vmem:[#allocation2 + $0x31] sm:$0xff] }
  0x7c   : > { %v239_v12 = vld [vmem:[#allocation2 + $0x38] sm:$0xff] }
  0x7d   : > { %v2298_v13 = vpack.i.bf16 %v239_v12, %v238_v11  ;;  %v299_v21 = vrot.slane %v239_v12, 4  ;;  %v2760_v47 = vld [vmem:[#allocation2 + $0x39] sm:$0xff] }
  0x7e   : > { %v2772_v53 = vpack.i.bf16 %v2760_v47, %v2767_v52 }
  0x7f   : > { %2299 = vrot.lane.b32.xlu2 %v2298_v13, %s2681_s19 }
  0x83   : > { %v206_v14 = vpop.permute.xlu1 %205  ;;  %v202_v15 = vpop.permute.xlu0 %201 }
  0x84   : > { %228 = vst.msk [vmem:[#allocation2 + $0x19] sm:$0xff] %vm225_vm2, %v206_v14 }
  0x85   : > { %226 = vst.msk [vmem:[#allocation2 + $0x1] sm:$0xff] %vm225_vm2, %v202_v15 }
  0x8b   : > { %v208_v17 = vpop.permute.xlu1 %207  ;;  %v204_v18 = vpop.permute.xlu0 %203  ;;  %v236_v24 = vld [vmem:[#allocation2 + $0x18] sm:$0xff] }
  0x8c   : > { %229 = vst.msk [vmem:[#allocation2 + $0x21] sm:$0xff] %vm225_vm2, %v208_v17  ;;  %v234_v19 = vld [vmem:[#allocation2] sm:$0xff]  ;;  %v257_v37 = vrot.slane %v236_v24, 4 }
  0x8d   : > { %227 = vst.msk [vmem:[#allocation2 + $0x9] sm:$0xff] %vm225_vm2, %v204_v18  ;;  %v244_v20 = vsel %vm243_vm3, %v242_v16, %v234_v19  ;;  %v245_v30 = vrot.slane %v234_v19, 4  ;;  %v2786_v4 = vld [vmem:[#allocation2 + $0x1] sm:$0xff] }
  0x8e   : > { %v2758_v44 = vperm.slane %v244_v20, %v2752_v34 }
  0x8f   : > { %v246_v35 = vsel %vm243_vm3, %v238_v11, %v245_v30 }
  0x90   : > { %v254_v41 = vperm.slane %v246_v35, %v2752_v34  ;;  %v269_v62 = vrot.slane %v2758_v44, 4 }
  0x92   : > { %v281_v55 = vrot.slane %v254_v41, 4 }
  0x93   : > { %v216_v22 = vpop.permute.xlu1 %215  ;;  %v214_v23 = vpop.permute.xlu0 %213  ;;  %v237_v25 = vld [vmem:[#allocation2 + $0x20] sm:$0xff] }
  0x94   : > { %233 = vst.msk [vmem:[#allocation2 + $0x51] sm:$0xff] %vm225_vm2, %v216_v22  ;;  %v2744_v26 = vpack.i.bf16 %v237_v25, %v236_v24  ;;  %v235_v27 = vld [vmem:[#allocation2 + $0x8] sm:$0xff]  ;;  %v313_v38 = vrot.slane %v237_v25, 4  ;;  %v2839_v30 = vld [vmem:[#allocation2 + $0x1a] sm:$0xff] }
  0x95   : > { %232 = vst.msk [vmem:[#allocation2 + $0x49] sm:$0xff] %vm225_vm2, %v214_v23  ;;  %v2308_v31 = vpack.i.bf16 %v235_v27, %v234_v19  ;;  %v300_v32 = vsel %vm243_vm3, %v299_v21, %v235_v27  ;;  %v301_v33 = vrot.slane %v235_v27, 4  ;;  %v2779_v60 = vld [vmem:[#allocation2 + $0x9] sm:$0xff]  ;;  %v2833_v27 = vld [vmem:[#allocation2 + $0x19] sm:$0xff] }
  0x96   : > { %2294 = vrot.lane.b32.xlu1 %v2744_v26, %s2681_s19  ;;  %v306_v56 = vperm.slane %v300_v32, %v2752_v34  ;;  %v2328_v9 = vpack.i.bf16 %v2779_v60, %v2786_v4 }
  0x97   : > { %2309 = vrot.lane.b32.xlu2 %v2308_v31, %s2683_s20  ;;  %2289 = vrot.lane.b32.xlu0 %v2308_v31, %s2681_s19  ;;  %v302_v36 = vsel %vm243_vm3, %v239_v12, %v301_v33 }
  0x98   : > { %v310_v48 = vperm.slane %v302_v36, %v2752_v34  ;;  %v325_v12 = vrot.slane %v306_v56, 4 }
  0x9a   : > { %v337_v59 = vrot.slane %v310_v48, 4 }
  0x9b   : > { %v2825_v22 = vld [vmem:[#allocation2 + $0x51] sm:$0xff] }
  0x9c   : > { %v240_v39 = vld [vmem:[#allocation2 + $0x48] sm:$0xff]  ;;  %v241_v40 = vld [vmem:[#allocation2 + $0x50] sm:$0xff] }
  0x9d   : > { %v311_v45 = vrot.slane %v241_v40, 4  ;;  %v2323_v46 = vpack.i.bf16 %v241_v40, %v240_v39  ;;  %v314_v49 = vsel %vm243_vm3, %v241_v40, %v313_v38  ;;  %v255_v50 = vrot.slane %v240_v39, 4  ;;  %v2823_v21 = vld [vmem:[#allocation2 + $0x49] sm:$0xff] }
  0x9e   : > { %2319 = vrot.lane.b32.xlu1 %v2298_v13, %s2683_s20  ;;  %v258_v51 = vsel %vm243_vm3, %v240_v39, %v257_v37  ;;  %v322_v58 = vperm.slane %v314_v49, %v2752_v34  ;;  %v2844_v33 = vld [vmem:[#allocation2 + $0x4a] sm:$0xff]  ;;  %v1484_v37 = vrot.slane %v2839_v30, 4 }
  0x9f   : > { %2324 = vrot.lane.b32.xlu2 %v2323_v46, %s2683_s20  ;;  %2304 = vrot.lane.b32.xlu0 %v2323_v46, %s2681_s19  ;;  %v266_v57 = vperm.slane %v258_v51, %v2752_v34  ;;  %v256_v61 = vsel %vm243_vm3, %v255_v50, %v236_v24  ;;  %v312_v63 = vsel %vm243_vm3, %v311_v45, %v237_v25  ;;  %v2829_v24 = vld [vmem:[#allocation2 + $0x21] sm:$0xff]  ;;  %v2871_v49 = vld [vmem:[#allocation2 + $0xa] sm:$0xff] }
  0xa0   : > { %v338_v1 = vsel %vm243_vm3, %v322_v58, %v337_v59  ;;  %v335_v3 = vrot.slane %v322_v58, 4  ;;  %v262_v7 = vperm.slane %v256_v61, %v2752_v34  ;;  %v318_v8 = vperm.slane %v312_v63, %v2752_v34 }
  0xa1   : > { %v282_v0 = vsel %vm243_vm3, %v266_v57, %v281_v55  ;;  %v279_v2 = vrot.slane %v266_v57, 4  ;;  %v2792_v6 = vperm.slane %v338_v1, %v2774_v54  ;;  %v2343_v25 = vpack.i.bf16 %v2825_v22, %v2823_v21 }
  0xa2   : > { %v2789_v5 = vperm.slane %v282_v0, %v2774_v54  ;;  %v336_v11 = vsel %vm243_vm3, %v335_v3, %v310_v48  ;;  %v270_v16 = vsel %vm243_vm3, %v262_v7, %v269_v62  ;;  %v326_v18 = vsel %vm243_vm3, %v318_v8, %v325_v12  ;;  %v2869_v48 = vld [vmem:[#allocation2 + $0x22] sm:$0xff] }
  0xa3   : > { %v280_v10 = vsel %vm243_vm3, %v279_v2, %v254_v41  ;;  %v2808_v15 = vperm.slane %v336_v11, %v2774_v54  ;;  %v2813_v17 = vperm.slane %v270_v16, %v2774_v54  ;;  %v2821_v20 = vperm.slane %v326_v18, %v2774_v54  ;;  %v2862_v41 = vld [vmem:[#allocation2 + $0x52] sm:$0xff] }
  0xa4   : > { %v2398_v13 = vpack.i.bf16 %v2792_v6, %v2789_v5  ;;  %v2805_v14 = vperm.slane %v280_v10, %v2774_v54  ;;  %v323_v28 = vrot.slane %v318_v8, 4  ;;  %v267_v29 = vrot.slane %v262_v7, 4  ;;  %v2904_v7 = vld [vmem:[#allocation2 + $0x32] sm:$0xff]  ;;  %v2906_v8 = vld [vmem:[#allocation2 + $0x3a] sm:$0xff] }
  0xa5   : > { %v2388_v23 = vpack.i.bf16 %v2821_v20, %v2813_v17  ;;  %v293_v31 = vrot.slane %v2813_v17, 4  ;;  %v349_v32 = vrot.slane %v2821_v20, 4  ;;  %v351_v43 = vrot.slane %v2808_v15, 4 }
  0xa6   : > { %2339 = vrot.lane.b32.xlu1 %v2772_v53, %s2681_s19  ;;  %v2393_v19 = vpack.i.bf16 %v2808_v15, %v2805_v14  ;;  %v2857_v39 = vsel %vm243_vm3, %v267_v29, %v2758_v44  ;;  %v2860_v40 = vsel %vm243_vm3, %v323_v28, %v306_v56  ;;  %v295_v42 = vrot.slane %v2805_v14, 4  ;;  %v2873_v44 = vld [vmem:[#allocation2 + $0x2] sm:$0xff] }
  0xa7   : > { %2329 = vrot.lane.b32.xlu2 %v2328_v9, %s2681_s19  ;;  %2314 = vrot.lane.b32.xlu0 %v2744_v26, %s2683_s20  ;;  %v2333_v26 = vpack.i.bf16 %v2829_v24, %v2833_v27  ;;  %v2847_v35 = vsel %vm243_vm3, 0.0, %v293_v31  ;;  %v2850_v36 = vsel %vm243_vm3, 0.0, %v349_v32  ;;  %v1485_v45 = vsel %vm243_vm3, %v2844_v33, %v1484_v37 }
  0xa8   : > { %v2428_v38 = vpack.i.bf16 %v2850_v36, %v2847_v35  ;;  %v297_v46 = vrot.slane %v2789_v5, 4  ;;  %v2876_v50 = vsel %vm243_vm3, 0.0, %v295_v42  ;;  %v2879_v51 = vsel %vm243_vm3, 0.0, %v351_v43 }
  0xa9   : > { %v2358_v55 = vpack.i.bf16 %v2862_v41, %v2844_v33  ;;  %v2433_v56 = vpack.i.bf16 %v2879_v51, %v2876_v50  ;;  %v1493_v57 = vperm.slane %v1485_v45, %v2752_v34  ;;  %v353_v59 = vrot.slane %v2792_v6, 4 }
  0xaa   : > { %v2890_v58 = vsel %vm243_vm3, 0.0, %v297_v46  ;;  %v1540_v61 = vrot.slane %v2869_v48, 4  ;;  %v1528_v62 = vrot.slane %v2871_v49, 4  ;;  %v1472_v63 = vrot.slane %v2873_v44, 4 }
  0xab   : > { %v2898_v0 = vsel %vm243_vm3, 0.0, %v353_v59  ;;  %v1506_v3 = vrot.slane %v1493_v57, 4  ;;  %v3063_v17 = vperm.slane %v2857_v39, %v2774_v54  ;;  %v3067_v20 = vperm.slane %v2860_v40, %v2774_v54 }
  0xac   : > { %v1541_v1 = vsel %vm243_vm3, %v2862_v41, %v1540_v61  ;;  %v2438_v2 = vpack.i.bf16 %v2898_v0, %v2890_v58  ;;  %v1529_v10 = vsel %vm243_vm3, %v2906_v8, %v1528_v62  ;;  %v1473_v11 = vsel %vm243_vm3, %v2904_v7, %v1472_v63 }
  0xad   : > { %v1481_v12 = vperm.slane %v1473_v11, %v2752_v34  ;;  %v1549_v16 = vperm.slane %v1541_v1, %v2752_v34  ;;  %v1537_v18 = vperm.slane %v1529_v10, %v2752_v34  ;;  %v860_v62 = vrot.slane %v2767_v52, 4 }
  0xae   : > { %2349 = vrot.lane.b32.xlu1 %v2328_v9, %s2683_s20  ;;  %v2368_v9 = vpack.i.bf16 %v2869_v48, %v2839_v30  ;;  %v862_v63 = vrot.slane %v2786_v4, 4  ;;  %v874_v1 = vrot.slane %v2833_v27, 4  ;;  %v916_v10 = vrot.slane %v2760_v47, 4 }
  0xaf   : > { %2344 = vrot.lane.b32.xlu2 %v2343_v25, %s2681_s19  ;;  %2334 = vrot.lane.b32.xlu0 %v2333_v26, %s2681_s19  ;;  %v1562_v28 = vrot.slane %v1549_v16, 4  ;;  %v1508_v59 = vrot.slane %v1481_v12, 4  ;;  %v1564_v61 = vrot.slane %v1537_v18, 4  ;;  %v930_v11 = vrot.slane %v2829_v24, 4 }
  0xb0   : > { %v291_v39 = vrot.slane %v3063_v17, 4  ;;  %v347_v40 = vrot.slane %v3067_v20, 4 }
  0xb1   : > { %v1563_v31 = vsel %vm243_vm3, %v1562_v28, %v1537_v18  ;;  %v918_v18 = vrot.slane %v2779_v60, 4 }
  0xb2   : > { %v2928_v37 = vperm.slane %v1563_v31, %v2774_v54 }
  0xb4   : > { %v1578_v43 = vrot.slane %v2928_v37, 4 }
  0xb6   : > { %1878 = vrot.lane.b32.xlu1 %v2844_v33, %s2683_s20  ;;  %v2941_v46 = vsel %vm243_vm3, 0.0, %v1578_v43  ;;  %v928_v43 = vrot.slane %v2825_v22, 4 }
  0xb7   : > { %2354 = vrot.lane.b32.xlu2 %v2333_v26, %s2683_s20  ;;  %2359 = vrot.lane.b32.xlu0 %v2358_v55, %s2681_s19  ;;  %v1507_v26 = vsel %vm243_vm3, %v1506_v3, %v1481_v12  ;;  %v1509_v3 = vsel %vm243_vm3, %v1493_v57, %v1508_v59  ;;  %v875_v57 = vsel %vm243_vm3, %v2823_v21, %v874_v1 }
  0xb8   : > { %v2923_v29 = vperm.slane %v1507_v26, %v2774_v54  ;;  %v863_v59 = vsel %vm243_vm3, %v2767_v52, %v862_v63  ;;  %v2383_v1 = vpack.i.bf16 %v2871_v49, %v2873_v44 }
  0xba   : > { %v1522_v32 = vrot.slane %v2923_v29, 4  ;;  %v2468_v45 = vpack.i.bf16 %v2928_v37, %v2923_v29 }
  0xbc   : > { %v2931_v42 = vsel %vm243_vm3, 0.0, %v1522_v32  ;;  %v861_v32 = vsel %vm243_vm3, %v860_v62, %v2786_v4  ;;  %v883_v4 = vperm.slane %v875_v57, %v2752_v34 }
  0xbd   : > { %v2478_v55 = vpack.i.bf16 %v2941_v46, %v2931_v42  ;;  %v867_v62 = vperm.slane %v861_v32, %v2752_v34 }
  0xbe   : > { %2369 = vrot.lane.b32.xlu1 %v2368_v9, %s2681_s19  ;;  %v1565_v9 = vsel %vm243_vm3, %v1549_v16, %v1564_v61  ;;  %v931_v16 = vsel %vm243_vm3, %v2825_v22, %v930_v11  ;;  %v917_v61 = vsel %vm243_vm3, %v916_v10, %v2779_v60  ;;  %v1526_v60 = vrot.slane %v2906_v8, 4 }
  0xbf   : > { %1880 = vrot.lane.b32.xlu2 %v2862_v41, %s2683_s20  ;;  %2364 = vrot.lane.b32.xlu0 %v2343_v25, %s2683_s20  ;;  %v2373_v25 = vpack.i.bf16 %v2906_v8, %v2904_v7  ;;  %v2965_v12 = vperm.slane %v1565_v9, %v2774_v54  ;;  %v939_v22 = vperm.slane %v931_v16, %v2752_v34  ;;  %v896_v57 = vrot.slane %v883_v4, 4 }
  0xc0   : > { %v929_v10 = vsel %vm243_vm3, %v928_v43, %v2829_v24  ;;  %v923_v11 = vperm.slane %v917_v61, %v2752_v34  ;;  %v1527_v24 = vsel %vm243_vm3, %v1526_v60, %v2871_v49  ;;  %v886_v32 = vrot.slane %v867_v62, 4 }
  0xc1   : > { %4459 = vst [vmem:[#allocation4_spill] sm:$0xff] %v2965_v12  ;;  %v1580_v31 = vrot.slane %v2965_v12, 4  ;;  %v952_v16 = vrot.slane %v939_v22, 4  ;;  %v3032_v60 = vperm.slane %v1527_v24, %v2752_v34 }
  0xc2   : > { %v942_v61 = vrot.slane %v923_v11, 4 }
  0xc3   : > { %v2990_v9 = vsel %vm243_vm3, 0.0, %v1580_v31 }
  0xc4   : > { %4461 = vst [vmem:[#allocation6_spill] sm:$0xff] %v2990_v9 }
  0xc6   : > { %1872 = vrot.lane.b32.xlu1 %v2869_v48, %s2683_s20 }
  0xc7   : > { %2374 = vrot.lane.b32.xlu2 %v2373_v25, %s2681_s19  ;;  %1870 = vrot.lane.b32.xlu0 %v2839_v30, %s2683_s20  ;;  %v872_v25 = vrot.slane %v2823_v21, 4  ;;  %v919_v21 = vsel %vm243_vm3, %v2760_v47, %v918_v18  ;;  %v871_v47 = vperm.slane %v863_v59, %v2752_v34  ;;  %v1470_v18 = vrot.slane %v2904_v7, 4 }
  0xc8   : > { %v1538_v59 = vrot.slane %v2862_v41, 4 }
  0xc9   : > { %v873_v63 = vsel %vm243_vm3, %v872_v25, %v2833_v27  ;;  %v1471_v31 = vsel %vm243_vm3, %v1470_v18, %v2873_v44  ;;  %v898_v43 = vrot.slane %v871_v47, 4  ;;  %v1482_v25 = vrot.slane %v2844_v33, 4 }
  0xca   : > { %v879_v27 = vperm.slane %v873_v63, %v2752_v34  ;;  %v1477_v63 = vperm.slane %v1471_v31, %v2752_v34  ;;  %v1539_v6 = vsel %vm243_vm3, %v1538_v59, %v2869_v48  ;;  %v292_v59 = vsel %vm243_vm3, 0.0, %v291_v39 }
  0xcb   : > { %v899_v33 = vsel %vm243_vm3, %v883_v4, %v898_v43  ;;  %v1483_v5 = vsel %vm243_vm3, %v1482_v25, %v2839_v30 }
  0xce   : > { %2379 = vrot.lane.b32.xlu1 %v2772_v53, %s2683_s20  ;;  %v2962_v53 = vperm.slane %v1509_v3, %v2774_v54 }
  0xcf   : > { %1874 = vrot.lane.b32.xlu2 %v2904_v7, %s2683_s20  ;;  %1876 = vrot.lane.b32.xlu0 %v2906_v8, %s2683_s20  ;;  %v927_v8 = vperm.slane %v919_v21, %v2752_v34 }
  0xd0   : > { %4458 = vst [vmem:[#allocation3_spill] sm:$0xff] %v2962_v53  ;;  %v1524_v28 = vrot.slane %v2962_v53, 4 }
  0xd1   : > { %v954_v7 = vrot.slane %v927_v8, 4  ;;  %v953_v21 = vsel %vm243_vm3, %v952_v16, %v927_v8  ;;  %v1552_v8 = vrot.slane %v3032_v60, 4  ;;  %v1496_v16 = vrot.slane %v1477_v63, 4 }
  0xd2   : > { %v2987_v3 = vsel %vm243_vm3, 0.0, %v1524_v28  ;;  %v935_v28 = vperm.slane %v929_v10, %v2752_v34  ;;  %v3051_v4 = vperm.slane %v953_v21, %v2774_v54  ;;  %v1545_v10 = vperm.slane %v1539_v6, %v2752_v34 }
  0xd3   : > { %4460 = vst [vmem:[#allocation5_spill] sm:$0xff] %v2987_v3  ;;  %v955_v41 = vsel %vm243_vm3, %v939_v22, %v954_v7  ;;  %v884_v22 = vrot.slane %v879_v27, 4 }
  0xd4   : > { %v963_v30 = vperm.slane %v955_v41, %v2774_v54  ;;  %v940_v48 = vrot.slane %v935_v28, 4  ;;  %v968_v36 = vrot.slane %v3051_v4, 4 }
  0xd6   : > { %1868 = vrot.lane.b32.xlu1 %v2871_v49, %s2683_s20  ;;  %v887_v49 = vsel %vm243_vm3, %v879_v27, %v886_v32  ;;  %v885_v27 = vsel %vm243_vm3, %v884_v22, %v867_v62  ;;  %v1553_v32 = vsel %vm243_vm3, %v1545_v10, %v1552_v8 }
  0xd7   : > { %2384 = vrot.lane.b32.xlu2 %v2383_v1, %s2681_s19  ;;  %1866 = vrot.lane.b32.xlu0 %v2873_v44, %s2683_s20  ;;  %v897_v1 = vsel %vm243_vm3, %v896_v57, %v871_v47  ;;  %v943_v44 = vsel %vm243_vm3, %v935_v28, %v942_v61  ;;  %v3054_v14 = vperm.slane %v887_v49, %v2774_v54  ;;  %v348_v61 = vsel %vm243_vm3, 0.0, %v347_v40 }
  0xd8   : > { %v3057_v15 = vperm.slane %v943_v44, %v2774_v54  ;;  %v941_v28 = vsel %vm243_vm3, %v940_v48, %v923_v11  ;;  %v3088_v43 = vperm.slane %v885_v27, %v2774_v54  ;;  %v1561_v11 = vperm.slane %v1553_v32, %v2774_v54 }
  0xd9   : > { %v3082_v24 = vpop.permute.xlu2 %2299  ;;  %v3091_v25 = vperm.slane %v941_v28, %v2774_v54  ;;  %v2423_v7 = vpack.i.bf16 %v348_v61, %v292_v59 }
  0xda   : > { %v2403_v18 = vpack.i.bf16 %v3057_v15, %v3054_v14  ;;  %4462 = vst [vmem:[#allocation7_spill] sm:$0xff] %v3088_v43  ;;  %v2302_v61 = vunpack.i.h.bf16 %v3082_v24 }
  0xdb   : > { %4463 = vst [vmem:[#allocation8_spill] sm:$0xff] %v3091_v25  ;;  %v964_v21 = vrot.slane %v3091_v25, 4 }
  0xdd   : > { %v965_v41 = vsel %vm243_vm3, 0.0, %v964_v21  ;;  %v2301_v21 = vunpack.i.l.bf16 %v3082_v24 }
  0xde   : > { %2399 = vrot.lane.b32.xlu1 %v2398_v13, %s2685_s21  ;;  %v3048_v13 = vperm.slane %v897_v1, %v2774_v54  ;;  %v908_v1 = vrot.slane %v3088_v43, 4 }
  0xdf   : > { %2394 = vrot.lane.b32.xlu2 %v2393_v19, %s2686_s22  ;;  %2389 = vrot.lane.b32.xlu0 %v2388_v23, %s2687_s23  ;;  %v907_v19 = vperm.slane %v899_v33, %v2774_v54  ;;  %v1489_v23 = vperm.slane %v1483_v5, %v2752_v34  ;;  %v1550_v5 = vrot.slane %v1545_v10, 4 }
  0xe0   : > { %v2408_v47 = vpack.i.bf16 %v3051_v4, %v3048_v13  ;;  %v909_v33 = vsel %vm243_vm3, 0.0, %v908_v1  ;;  %v912_v35 = vrot.slane %v3048_v13, 4 }
  0xe1   : > { %v2413_v57 = vpack.i.bf16 %v963_v30, %v907_v19  ;;  %v1497_v31 = vsel %vm243_vm3, %v1489_v23, %v1496_v16  ;;  %v1494_v6 = vrot.slane %v1489_v23, 4  ;;  %v2443_v48 = vpack.i.bf16 %v965_v41, %v909_v33 }
  0xe2   : > { %v1505_v62 = vperm.slane %v1497_v31, %v2774_v54  ;;  %v914_v22 = vrot.slane %v907_v19, 4  ;;  %v1551_v8 = vsel %vm243_vm3, %v1550_v5, %v3032_v60  ;;  %v910_v19 = vrot.slane %v3054_v14, 4 }
  0xe3   : > { %v3133_v58 = vperm.slane %v1551_v8, %v2774_v54  ;;  %v913_v0 = vsel %vm243_vm3, 0.0, %v912_v35  ;;  %v520_v5 = vrot.slane %v2302_v61, 4 }
  0xe4   : > { %v2418_v49 = vpack.i.bf16 %v1561_v11, %v1505_v62  ;;  %v915_v60 = vsel %vm243_vm3, 0.0, %v914_v22  ;;  %v911_v14 = vsel %vm243_vm3, 0.0, %v910_v19 }
  0xe5   : > { %4465 = vst [vmem:[#allocation10_spill] sm:$0xff] %v3133_v58  ;;  %v1574_v23 = vrot.slane %v3133_v58, 4 }
  0xe6   : > { %2409 = vrot.lane.b32.xlu1 %v2408_v47, %s2686_s22  ;;  %v970_v47 = vrot.slane %v963_v30, 4  ;;  %v966_v30 = vrot.slane %v3057_v15, 4 }
  0xe7   : > { %2404 = vrot.lane.b32.xlu2 %v2403_v18, %s2687_s23  ;;  %2414 = vrot.lane.b32.xlu0 %v2413_v57, %s2685_s21  ;;  %v1520_v18 = vrot.slane %v1505_v62, 4  ;;  %v1576_v57 = vrot.slane %v1561_v11, 4  ;;  %v1575_v40 = vsel %vm243_vm3, 0.0, %v1574_v23 }
  0xe8   : > { %v971_v13 = vsel %vm243_vm3, 0.0, %v970_v47  ;;  %v967_v50 = vsel %vm243_vm3, 0.0, %v966_v30 }
  0xe9   : > { %v2458_v51 = vpack.i.bf16 %v971_v13, %v915_v60  ;;  %v2448_v10 = vpack.i.bf16 %v967_v50, %v911_v14  ;;  %v1521_v27 = vsel %vm243_vm3, 0.0, %v1520_v18  ;;  %v1577_v28 = vsel %vm243_vm3, 0.0, %v1576_v57 }
  0xea   : > { %v2473_v32 = vpack.i.bf16 %v1577_v28, %v1521_v27 }
  0xee   : > { %2429 = vrot.lane.b32.xlu1 %v2428_v38, %s2688_s24  ;;  %v1495_v38 = vsel %vm243_vm3, %v1494_v6, %v1477_v63 }
  0xef   : > { %2424 = vrot.lane.b32.xlu2 %v2423_v7, %s2689_s25  ;;  %2419 = vrot.lane.b32.xlu0 %v2418_v49, %s2687_s23  ;;  %v3130_v4 = vperm.slane %v1495_v38, %v2774_v54 }
  0xf1   : > { %v3105_v44 = vpop.permute.xlu2 %2309  ;;  %4464 = vst [vmem:[#allocation9_spill] sm:$0xff] %v3130_v4  ;;  %v1518_v15 = vrot.slane %v3130_v4, 4 }
  0xf2   : > { %v2312_v49 = vunpack.i.h.bf16 %v3105_v44  ;;  %v2311_v33 = vunpack.i.l.bf16 %v3105_v44  ;;  %v464_v44 = vrot.slane %v2301_v21, 4 }
  0xf3   : > { %v1519_v39 = vsel %vm243_vm3, 0.0, %v1518_v15 }
  0xf4   : > { %v2463_v31 = vpack.i.bf16 %v1575_v40, %v1519_v39  ;;  %v728_v47 = vrot.slane %v2312_v49, 4  ;;  %v672_v8 = vrot.slane %v2311_v33, 4 }
  0xf6   : > { %2444 = vrot.lane.b32.xlu1 %v2443_v48, %s2689_s25 }
  0xf7   : > { %2439 = vrot.lane.b32.xlu2 %v2438_v2, %s2690_s26  ;;  %2434 = vrot.lane.b32.xlu0 %v2433_v56, %s2691_s27  ;;  %v969_v2 = vsel %vm243_vm3, 0.0, %v968_v36 }
  0xf8   : > { %v2453_v56 = vpack.i.bf16 %v969_v2, %v913_v0 }
  0xf9   : > { %v3125_v63 = vpop.permute.xlu2 %2324 }
  0xfa   : > { %v2327_v41 = vunpack.i.h.bf16 %v3125_v63  ;;  %v2326_v42 = vunpack.i.l.bf16 %v3125_v63 }
  0xfc   : > { %v3177_v29 = vrot.slane %v2327_v41, 4  ;;  %v3181_v37 = vrot.slane %v2326_v42, 4 }
  0xfe   : > { %2459 = vrot.lane.b32.xlu1 %v2458_v51, %s2690_s26 }
  0xff   : > { %2454 = vrot.lane.b32.xlu2 %v2453_v56, %s2691_s27  ;;  %2449 = vrot.lane.b32.xlu0 %v2448_v10, %s2688_s24 }
 0x101   : > { %v3144_v16 = vpop.permute.xlu2 %2329 }
 0x102   : > { %v2332_v46 = vunpack.i.h.bf16 %v3144_v16 }
 0x104   : > { %v3186_v30 = vrot.slane %v2332_v46, 4 }
 0x106   : > { %2464 = vrot.lane.b32.xlu1 %v2463_v31, %s2689_s25 }
 0x107   : > { %2474 = vrot.lane.b32.xlu2 %v2473_v32, %s2688_s24  ;;  %2479 = vrot.lane.b32.xlu0 %v2478_v55, %s2691_s27 }
 0x108   : > { %v3156_v62 = vpop.permute.xlu1 %2294 }
 0x109   : > { %v3158_v11 = vpop.permute.xlu2 %2344  ;;  %v2290_v59 = vpop.permute.xlu0 %2289  ;;  %v2297_v55 = vunpack.i.h.bf16 %v3156_v62  ;;  %v2296_v24 = vunpack.i.l.bf16 %v3156_v62 }
 0x10a   : > { %v2292_v7 = vunpack.i.h.bf16 %v2290_v59  ;;  %v2291_v1 = vunpack.i.l.bf16 %v2290_v59  ;;  %v2347_v13 = vunpack.i.h.bf16 %v3158_v11  ;;  %v2346_v18 = vunpack.i.l.bf16 %v3158_v11 }
 0x10b   : > { %v534_v60 = vrot.slane %v2297_v55, 4  ;;  %v478_v2 = vrot.slane %v2296_v24, 4 }
 0x10c   : > { %v522_v6 = vrot.slane %v2292_v7, 4  ;;  %v466_v48 = vrot.slane %v2291_v1, 4  ;;  %v521_v0 = vsel %vm243_vm3, %v520_v5, %v2292_v7  ;;  %v465_v50 = vsel %vm243_vm3, %v464_v44, %v2291_v1 }
 0x10d   : > { %v3197_v57 = vperm.slane %v521_v0, %v2752_v34  ;;  %v3202_v27 = vperm.slane %v465_v50, %v2752_v34 }
 0x10e   : > { %2469 = vrot.lane.b32.xlu1 %v2468_v45, %s2686_s22  ;;  %v2331_v45 = vunpack.i.l.bf16 %v3144_v16  ;;  %v523_v14 = vsel %vm243_vm3, %v2302_v61, %v522_v6  ;;  %v467_v51 = vsel %vm243_vm3, %v2301_v21, %v466_v48  ;;  %v3210_v61 = vrot.slane %v2347_v13, 4 }
 0x10f   : > { %v531_v7 = vperm.slane %v523_v14, %v2752_v34  ;;  %v475_v1 = vperm.slane %v467_v51, %v2752_v34 }
 0x110   : > { %v2320_v22 = vpop.permute.xlu1 %2319  ;;  %v1076_v59 = vrot.slane %v2331_v45, 4 }
 0x111   : > { %v2322_v35 = vunpack.i.h.bf16 %v2320_v22  ;;  %v2321_v36 = vunpack.i.l.bf16 %v2320_v22  ;;  %v3173_v38 = vpop.permute.xlu2 %2354  ;;  %v2305_v19 = vpop.permute.xlu0 %2304  ;;  %v502_v14 = vrot.slane %v475_v1, 4 }
 0x112   : > { %v2307_v23 = vunpack.i.h.bf16 %v2305_v19  ;;  %v2306_v10 = vunpack.i.l.bf16 %v2305_v19  ;;  %v546_v19 = vrot.slane %v3197_v57, 4  ;;  %v4478_v4 = vunpack.i.h.bf16 %v3173_v38 }
 0x113   : > { %v726_v56 = vrot.slane %v2322_v35, 4  ;;  %v670_v15 = vrot.slane %v2321_v36, 4  ;;  %v673_v39 = vsel %vm243_vm3, %v2321_v36, %v672_v8  ;;  %v729_v40 = vsel %vm243_vm3, %v2322_v35, %v728_v47 }
 0x114   : > { %v535_v28 = vsel %vm243_vm3, %v2307_v23, %v534_v60  ;;  %v476_v31 = vrot.slane %v2306_v10, 4  ;;  %v479_v32 = vsel %vm243_vm3, %v2306_v10, %v478_v2  ;;  %v3216_v6 = vperm.slane %v673_v39, %v2752_v34 }
 0x115   : > { %v671_v5 = vsel %vm243_vm3, %v670_v15, %v2311_v33  ;;  %v727_v48 = vsel %vm243_vm3, %v726_v56, %v2312_v49  ;;  %v3220_v22 = vperm.slane %v729_v40, %v2752_v34  ;;  %v3226_v47 = vrot.slane %v2346_v18, 4 }
 0x116   : > { %v532_v35 = vrot.slane %v2307_v23, 4  ;;  %v543_v36 = vperm.slane %v535_v28, %v2752_v34  ;;  %v487_v8 = vperm.slane %v479_v32, %v2752_v34  ;;  %v490_v60 = vrot.slane %v3202_v27, 4 }
 0x117   : > { %v477_v49 = vsel %vm243_vm3, %v476_v31, %v2296_v24  ;;  %v558_v2 = vrot.slane %v531_v7, 4  ;;  %v3234_v50 = vperm.slane %v671_v5, %v2752_v34  ;;  %v3237_v51 = vperm.slane %v727_v48, %v2752_v34 }
 0x118   : > { %v2340_v21 = vpop.permute.xlu1 %2339  ;;  %v533_v39 = vsel %vm243_vm3, %v532_v35, %v2297_v55  ;;  %v556_v24 = vrot.slane %v543_v36, 4  ;;  %v3245_v40 = vperm.slane %v477_v49, %v2752_v34  ;;  %v500_v28 = vrot.slane %v487_v8, 4 }
 0x119   : > { %v3222_v44 = vpop.permute.xlu2 %1880  ;;  %v2315_v33 = vpop.permute.xlu0 %2314  ;;  %v2341_v0 = vunpack.i.l.bf16 %v2340_v21  ;;  %v2342_v23 = vunpack.i.h.bf16 %v2340_v21  ;;  %v503_v48 = vsel %vm243_vm3, %v487_v8, %v502_v14  ;;  %v696_v52 = vrot.slane %v3234_v50, 4 }
 0x11a   : > { %v2317_v10 = vunpack.i.h.bf16 %v2315_v33  ;;  %v2316_v5 = vunpack.i.l.bf16 %v2315_v33  ;;  %v752_v21 = vrot.slane %v3237_v51, 4  ;;  %v3252_v62 = vperm.slane %v503_v48, %v2774_v54 }
 0x11b   : > { %v1077_v31 = vsel %vm243_vm3, %v2341_v0, %v1076_v59  ;;  %v1074_v26 = vrot.slane %v2341_v0, 4  ;;  %v3257_v35 = vperm.slane %v533_v39, %v2752_v34  ;;  %v1130_v49 = vrot.slane %v2342_v23, 4 }
 0x11c   : > { %v740_v32 = vrot.slane %v2317_v10, 4  ;;  %v684_v15 = vrot.slane %v2316_v5, 4  ;;  %v559_v59 = vsel %vm243_vm3, %v543_v36, %v558_v2  ;;  %v3263_v8 = vperm.slane %v1077_v31, %v2752_v34 }
 0x11d   : > { %v1133_v0 = vsel %vm243_vm3, %v2342_v23, %v3186_v30  ;;  %v3271_v48 = vperm.slane %v559_v59, %v2774_v54  ;;  %v683_v56 = vsel %vm243_vm3, %v3181_v37, %v2316_v5  ;;  %v501_v36 = vsel %vm243_vm3, %v500_v28, %v475_v1 }
 0x11e   : > { %v741_v14 = vsel %vm243_vm3, %v2327_v41, %v740_v32  ;;  %v557_v2 = vsel %vm243_vm3, %v556_v24, %v531_v7  ;;  %v491_v31 = vsel %vm243_vm3, %v3245_v40, %v490_v60  ;;  %v1075_v30 = vsel %vm243_vm3, %v1074_v26, %v2331_v45 }
 0x11f   : > { %4466 = vst [vmem:[#allocation11_spill] sm:$0xff] %v3271_v48  ;;  %v739_v41 = vsel %vm243_vm3, %v3177_v29, %v2317_v10  ;;  %v685_v23 = vsel %vm243_vm3, %v2326_v42, %v684_v15  ;;  %v2493_v37 = vpack.i.bf16 %v3271_v48, %v3252_v62  ;;  %v3290_v1 = vperm.slane %v501_v36, %v2774_v54 }
 0x120   : > { %v3254_v55 = vpop.permute.xlu1 %2349  ;;  %v3293_v7 = vperm.slane %v557_v2, %v2774_v54  ;;  %v3296_v60 = vperm.slane %v491_v31, %v2774_v54  ;;  %v547_v26 = vsel %vm243_vm3, %v3257_v35, %v546_v19  ;;  %v1131_v63 = vsel %vm243_vm3, %v1130_v49, %v2332_v46 }
 0x121   : > { %v3260_v33 = vpop.permute.xlu2 %2374  ;;  %v2335_v39 = vpop.permute.xlu0 %2334  ;;  %v749_v42 = vperm.slane %v741_v14, %v2752_v34  ;;  %v3305_v29 = vperm.slane %v683_v56, %v2752_v34  ;;  %2494 = vrot.lane.b32.xlu0 %v2493_v37, %s2685_s21  ;;  %v3309_v45 = vperm.slane %v547_v26, %v2774_v54  ;;  %v3312_v15 = vperm.slane %v739_v41, %v2752_v34 }
 0x122   : > { %v693_v10 = vperm.slane %v685_v23, %v2752_v34  ;;  %v2488_v16 = vpack.i.bf16 %v3293_v7, %v3290_v1  ;;  %v2337_v19 = vunpack.i.h.bf16 %v2335_v39  ;;  %v3318_v46 = vperm.slane %v1075_v30, %v2752_v34 }
 0x123   : > { %v1141_v56 = vperm.slane %v1133_v0, %v2752_v34  ;;  %v2483_v24 = vpack.i.bf16 %v3309_v45, %v3296_v60  ;;  %v2336_v28 = vunpack.i.l.bf16 %v2335_v39  ;;  %v1112_v5 = vrot.slane %v3263_v8, 4 }
 0x124   : > { %v3327_v49 = vperm.slane %v1131_v63, %v2752_v34  ;;  %2489 = vrot.lane.b32.xlu1 %v2488_v16, %s2686_s22  ;;  %v1143_v59 = vsel %vm243_vm3, %v3210_v61, %v2337_v19  ;;  %v1144_v14 = vrot.slane %v2337_v19, 4  ;;  %v762_v0 = vrot.slane %v749_v42, 4 }
 0x125   : > { %2484 = vrot.lane.b32.xlu2 %v2483_v24, %s2687_s23  ;;  %v1087_v39 = vsel %vm243_vm3, %v3226_v47, %v2336_v28  ;;  %v1088_v2 = vrot.slane %v2336_v28, 4  ;;  %v697_v31 = vsel %vm243_vm3, %v3305_v29, %v696_v52  ;;  %v706_v41 = vrot.slane %v693_v10, 4 }
 0x126   : > { %4467 = vst [vmem:[#allocation12_spill] sm:$0xff] %v3327_v49  ;;  %v1145_v61 = vsel %vm243_vm3, %v2347_v13, %v1144_v14  ;;  %v3345_v23 = vperm.slane %v697_v31, %v2774_v54  ;;  %v753_v37 = vsel %vm243_vm3, %v3312_v15, %v752_v21  ;;  %v3350_v26 = vperm.slane %v1143_v59, %v2752_v34 }
 0x127   : > { %v1153_v47 = vperm.slane %v1145_v61, %v2752_v34  ;;  %v1089_v52 = vsel %vm243_vm3, %v2346_v18, %v1088_v2  ;;  %v3357_v63 = vperm.slane %v753_v37, %v2774_v54  ;;  %v3360_v13 = vperm.slane %v1087_v39, %v2752_v34 }
 0x128   : > { %v3323_v32 = vpop.permute.xlu1 %1878  ;;  %v1097_v16 = vperm.slane %v1089_v52, %v2752_v34  ;;  %v4468_v19 = vrot.slane %v3216_v6, 4  ;;  %v4469_v24 = vrot.slane %v3220_v22, 4  ;;  %v1100_v11 = vrot.slane %v3318_v46, 4 }
 0x129   : > { %v3332_v36 = vpop.permute.xlu2 %1874  ;;  %v3339_v30 = vpop.permute.xlu0 %2359  ;;  %v1156_v18 = vrot.slane %v3327_v49, 4  ;;  %v1166_v39 = vrot.slane %v1153_v47, 4  ;;  %v2498_v2 = vpack.i.bf16 %v3357_v63, %v3345_v23  ;;  %v1350_v58 = vrot.slane %v4478_v4, 4 }
 0x12a   : > { %v709_v21 = vsel %vm243_vm3, %v693_v10, %v4468_v19  ;;  %v765_v28 = vsel %vm243_vm3, %v749_v42, %v4469_v24  ;;  %v707_v10 = vsel %vm243_vm3, %v706_v41, %v3216_v6  ;;  %v763_v42 = vsel %vm243_vm3, %v762_v0, %v3220_v22 }
 0x12b   : > { %v3372_v59 = vperm.slane %v709_v21, %v2774_v54  ;;  %v3375_v14 = vperm.slane %v765_v28, %v2774_v54  ;;  %v1110_v31 = vrot.slane %v1097_v16, 4  ;;  %v3386_v37 = vperm.slane %v707_v10, %v2774_v54 }
 0x12c   : > { %v3389_v52 = vperm.slane %v763_v42, %v2774_v54  ;;  %v1168_v21 = vrot.slane %v1141_v56, 4  ;;  %2499 = vrot.lane.b32.xlu1 %v2498_v2, %s2687_s23  ;;  %v1101_v6 = vsel %vm243_vm3, %v3360_v13, %v1100_v11  ;;  %v1157_v22 = vsel %vm243_vm3, %v3350_v26, %v1156_v18 }
 0x12d   : > { %v2508_v61 = vpack.i.bf16 %v3375_v14, %v3372_v59  ;;  %v1113_v28 = vsel %vm243_vm3, %v1097_v16, %v1112_v5  ;;  %v3406_v2 = vperm.slane %v1101_v6, %v2774_v54  ;;  %v3409_v11 = vperm.slane %v1157_v22, %v2774_v54 }
 0x12e   : > { %4470 = vst [vmem:[#allocation13_spill] sm:$0xff] %v3389_v52  ;;  %v2503_v24 = vpack.i.bf16 %v3389_v52, %v3386_v37  ;;  %v3412_v18 = vperm.slane %v1113_v28, %v2774_v54  ;;  %v1169_v42 = vsel %vm243_vm3, %v1153_v47, %v1168_v21  ;;  %v1111_v5 = vsel %vm243_vm3, %v1110_v31, %v3263_v8 }
 0x12f   : > { %2509 = vrot.lane.b32.xlu2 %v2508_v61, %s2685_s21  ;;  %4471 = vst [vmem:[#allocation14_spill] sm:$0xff] %v3406_v2  ;;  %v2377_v61 = vunpack.i.h.bf16 %v3260_v33  ;;  %v3418_v41 = vperm.slane %v1169_v42, %v2774_v54  ;;  %v1167_v16 = vsel %vm243_vm3, %v1166_v39, %v1141_v56  ;;  %v3424_v6 = vperm.slane %v1111_v5, %v2774_v54 }
 0x130   : > { %v3391_v19 = vpop.permute.xlu1 %2369  ;;  %4472 = vst [vmem:[#allocation15_spill] sm:$0xff] %v3409_v11  ;;  %2504 = vrot.lane.b32.xlu0 %v2503_v24, %s2686_s22  ;;  %v3427_v22 = vperm.slane %v1167_v16, %v2774_v54  ;;  %v4477_v56 = vunpack.i.l.bf16 %v3260_v33  ;;  %v2361_v31 = vunpack.i.l.bf16 %v3339_v30  ;;  %v2513_v5 = vpack.i.bf16 %v3409_v11, %v3406_v2 }
 0x131   : > { %v2385_v0 = vpop.permute.xlu2 %2384  ;;  %v3403_v10 = vpop.permute.xlu0 %2364  ;;  %4473 = vst [vmem:[#allocation16_spill] sm:$0xff] %v3412_v18  ;;  %v2372_v47 = vunpack.i.h.bf16 %v3391_v19  ;;  %v2371_v21 = vunpack.i.l.bf16 %v3391_v19  ;;  %v2523_v42 = vpack.i.bf16 %v3418_v41, %v3412_v18  ;;  %v1740_v28 = vrot.slane %v2377_v61, 4 }
 0x132   : > { %4474 = vst [vmem:[#allocation17_spill] sm:$0xff] %v3418_v41  ;;  %v2386_v8 = vunpack.i.l.bf16 %v2385_v0  ;;  %v1684_v39 = vrot.slane %v4477_v56, 4  ;;  %v2387_v16 = vunpack.i.h.bf16 %v2385_v0  ;;  %v2518_v19 = vpack.i.bf16 %v3427_v22, %v3424_v6 }
 0x133   : > { %4475 = vst [vmem:[#allocation18_spill] sm:$0xff] %v3424_v6  ;;  %v1754_v3 = vrot.slane %v2372_v47, 4  ;;  %v1698_v24 = vrot.slane %v2371_v21, 4  ;;  %v2362_v53 = vunpack.i.h.bf16 %v3339_v30  ;;  %v4479_v6 = vunpack.i.l.bf16 %v3173_v38 }
 0x134   : > { %4476 = vst [vmem:[#allocation19_spill] sm:$0xff] %v3427_v22  ;;  %2514 = vrot.lane.b32.xlu1 %v2513_v5, %s2687_s23  ;;  %v1685_v12 = vsel %vm243_vm3, %v1684_v39, %v2386_v8  ;;  %v1696_v18 = vrot.slane %v2361_v31, 4  ;;  %v1741_v5 = vsel %vm243_vm3, %v1740_v28, %v2387_v16  ;;  %v1686_v11 = vrot.slane %v2386_v8, 4 }
 0x135   : > { %v1294_v41 = vrot.slane %v4479_v6, 4  ;;  %v1699_v39 = vsel %vm243_vm3, %v2361_v31, %v1698_v24  ;;  %v1755_v4 = vsel %vm243_vm3, %v2362_v53, %v1754_v3  ;;  %v3461_v0 = vperm.slane %v1685_v12, %v2752_v34 }
 0x136   : > { %v1742_v2 = vrot.slane %v2387_v16, 4  ;;  %v3464_v52 = vperm.slane %v1741_v5, %v2752_v34  ;;  %v2367_v6 = vunpack.i.h.bf16 %v3403_v10  ;;  %v1958_v28 = vrot.slane %v3222_v44, 4 }
 0x137   : > { %2524 = vrot.lane.b32.xlu2 %v2523_v42, %s2685_s21  ;;  %4480 = vst [vmem:[#allocation20_spill] sm:$0xff] %v3461_v0  ;;  %v1752_v42 = vrot.slane %v2362_v53, 4  ;;  %v1697_v3 = vsel %vm243_vm3, %v1696_v18, %v2371_v21  ;;  %v3475_v12 = vperm.slane %v1699_v39, %v2752_v34  ;;  %v3479_v8 = vperm.slane %v1755_v4, %v2752_v34 }
 0x138   : > { %v1873_v9 = vpop.permute.xlu1 %1872  ;;  %2519 = vrot.lane.b32.xlu0 %v2518_v19, %s2686_s22  ;;  %4481 = vst [vmem:[#allocation21_spill] sm:$0xff] %v3464_v52  ;;  %v4482_v19 = vunpack.i.h.bf16 %v3254_v55  ;;  %v2366_v31 = vunpack.i.l.bf16 %v3403_v10  ;;  %v4483_v16 = vunpack.i.l.bf16 %v3254_v55  ;;  %v1902_v30 = vrot.slane %v3323_v32, 4 }
 0x139   : > { %v3445_v56 = vpop.permute.xlu2 %2394  ;;  %v3451_v22 = vpop.permute.xlu0 %1870  ;;  %v1753_v53 = vsel %vm243_vm3, %v1752_v42, %v2372_v47  ;;  %v1710_v21 = vrot.slane %v3461_v0, 4  ;;  %v1743_v47 = vsel %vm243_vm3, %v2377_v61, %v1742_v2  ;;  %v1766_v4 = vrot.slane %v3464_v52, 4 }
 0x13a   : > { %v3471_v24 = vrot.slane %v4482_v19, 4  ;;  %v3484_v5 = vrot.slane %v4483_v16, 4  ;;  %v4484_v19 = vunpack.i.l.bf16 %v3260_v33  ;;  %v1351_v42 = vsel %vm243_vm3, %v2367_v6, %v1350_v58 }
 0x13b   : > { %v1960_v10 = vrot.slane %v1873_v9, 4  ;;  %v1890_v16 = vrot.slane %v3332_v36, 4  ;;  %v3498_v49 = vperm.slane %v1697_v3, %v2752_v34  ;;  %v3501_v33 = vperm.slane %v1753_v53, %v2752_v34 }
 0x13c   : > { %v1687_v18 = vsel %vm243_vm3, %v4484_v19, %v1686_v11  ;;  %v1348_v11 = vrot.slane %v2367_v6, 4  ;;  %v1292_v58 = vrot.slane %v2366_v31, 4  ;;  %v3509_v52 = vperm.slane %v1743_v47, %v2752_v34 }
 0x13d   : > { %4485 = vst [vmem:[#allocation22_spill] sm:$0xff] %v3501_v33  ;;  %v3506_v61 = vperm.slane %v1687_v18, %v2752_v34  ;;  %v3512_v43 = vperm.slane %v1351_v42, %v2752_v34  ;;  %v1295_v3 = vsel %vm243_vm3, %v2366_v31, %v1294_v41  ;;  %v1711_v6 = vsel %vm243_vm3, %v3498_v49, %v1710_v21 }
 0x13e   : > { %v1961_v53 = vsel %vm243_vm3, %v3222_v44, %v1960_v10  ;;  %v3520_v2 = vperm.slane %v1711_v6, %v2774_v54  ;;  %v1767_v18 = vsel %vm243_vm3, %v3501_v33, %v1766_v4  ;;  %v4488_v47 = vunpack.i.h.bf16 %v3173_v38 }
 0x13f   : > { %4486 = vst [vmem:[#allocation23_spill] sm:$0xff] %v3512_v43  ;;  %v1959_v25 = vsel %vm243_vm3, %v1958_v28, %v1873_v9  ;;  %v3529_v41 = vperm.slane %v1767_v18, %v2774_v54  ;;  %v4490_v44 = vunpack.i.l.bf16 %v3173_v38  ;;  %v3536_v6 = vperm.slane %v1295_v3, %v2752_v34 }
 0x140   : > { %v2380_v39 = vpop.permute.xlu1 %2379  ;;  %4487 = vst [vmem:[#allocation24_spill] sm:$0xff] %v3520_v2  ;;  %v1349_v42 = vsel %vm243_vm3, %v1348_v11, %v4488_v47  ;;  %v3540_v11 = vperm.slane %v1961_v53, %v2752_v34  ;;  %v1372_v38 = vrot.slane %v3512_v43, 4  ;;  %v4493_v3 = vunpack.i.h.bf16 %v3254_v55 }
 0x141   : > { %v3494_v48 = vpop.permute.xlu2 %2404  ;;  %v1877_v19 = vpop.permute.xlu0 %1876  ;;  %v2382_v0 = vunpack.i.h.bf16 %v2380_v39  ;;  %4489 = vst [vmem:[#allocation25_spill] sm:$0xff] %v3529_v41  ;;  %v2381_v31 = vunpack.i.l.bf16 %v2380_v39  ;;  %v1293_v10 = vsel %vm243_vm3, %v1292_v58, %v4490_v44  ;;  %v2528_v9 = vpack.i.bf16 %v3529_v41, %v3520_v2 }
 0x142   : > { %4491 = vst [vmem:[#allocation26_spill] sm:$0xff] %v3536_v6  ;;  %v3545_v18 = vperm.slane %v1349_v42, %v2752_v34  ;;  %v3549_v58 = vperm.slane %v1959_v25, %v2752_v34  ;;  %v3555_v53 = vperm.slane %v1293_v10, %v2752_v34  ;;  %v4495_v42 = vunpack.i.l.bf16 %v3254_v55 }
 0x143   : > { %v1336_v4 = vrot.slane %v2382_v0, 4  ;;  %4492 = vst [vmem:[#allocation27_spill] sm:$0xff] %v3540_v11  ;;  %v1280_v28 = vrot.slane %v2381_v31, 4  ;;  %2529 = vrot.lane.b32.xlu0 %v2528_v9, %s2687_s23  ;;  %v1946_v21 = vrot.slane %v1877_v19, 4  ;;  %v1316_v25 = vrot.slane %v3536_v6, 4 }
 0x144   : > { %v1903_v41 = vsel %vm243_vm3, %v1902_v30, %v3451_v22  ;;  %v1982_v9 = vrot.slane %v3540_v11, 4  ;;  %v1283_v2 = vsel %vm243_vm3, %v2381_v31, %v3484_v5 }
 0x145   : > { %v1337_v47 = vsel %vm243_vm3, %v1336_v4, %v4493_v3  ;;  %v1281_v33 = vsel %vm243_vm3, %v1280_v28, %v4495_v42  ;;  %v1339_v42 = vsel %vm243_vm3, %v2382_v0, %v3471_v24 }
 0x146   : > { %v3559_v44 = vperm.slane %v1337_v47, %v2752_v34  ;;  %v3568_v4 = vperm.slane %v1281_v33, %v2752_v34  ;;  %v1904_v47 = vrot.slane %v3451_v22, 4 }
 0x148   : > { %v1869_v39 = vpop.permute.xlu1 %1868  ;;  %4494 = vst [vmem:[#allocation28_spill] sm:$0xff] %v3559_v44  ;;  %v1362_v55 = vrot.slane %v3559_v44, 4  ;;  %v1306_v6 = vrot.slane %v3568_v4, 4 }
 0x149   : > { %v1867_v43 = vpop.permute.xlu0 %1866  ;;  %v1948_v10 = vrot.slane %v1869_v39, 4  ;;  %v2425_v3 = vpop.permute.xlu2 %2424  ;;  %v1947_v28 = vsel %vm243_vm3, %v1946_v21, %v1869_v39 }
 0x14a   : > { %v3578_v30 = vperm.slane %v1947_v28, %v2752_v34  ;;  %v1891_v33 = vsel %vm243_vm3, %v1890_v16, %v1867_v43  ;;  %v2427_v11 = vunpack.i.h.bf16 %v2425_v3  ;;  %v2426_v22 = vunpack.i.l.bf16 %v2425_v3 }
 0x14b   : > { %v1949_v44 = vsel %vm243_vm3, %v1877_v19, %v1948_v10  ;;  %v3585_v21 = vperm.slane %v1891_v33, %v2752_v34  ;;  %v1307_v0 = vsel %vm243_vm3, %v3555_v53, %v1306_v6  ;;  %v1363_v24 = vsel %vm243_vm3, %v3545_v18, %v1362_v55 }
 0x14c   : > { %v1972_v39 = vrot.slane %v3578_v30, 4  ;;  %v1892_v16 = vrot.slane %v1867_v43, 4  ;;  %v3593_v28 = vperm.slane %v1307_v0, %v2774_v54  ;;  %v3596_v5 = vperm.slane %v1363_v24, %v2774_v54 }
 0x14d   : > { %v1905_v19 = vsel %vm243_vm3, %v3323_v32, %v1904_v47  ;;  %v3603_v10 = vperm.slane %v1903_v41, %v2752_v34  ;;  %v3606_v6 = vperm.slane %v1283_v2, %v2752_v34  ;;  %v1916_v3 = vrot.slane %v3585_v21, 4 }
 0x14e   : > { %v3610_v43 = vperm.slane %v1339_v42, %v2752_v34  ;;  %v3613_v55 = vperm.slane %v1949_v44, %v2752_v34  ;;  %v2533_v33 = vpack.i.bf16 %v3596_v5, %v3593_v28  ;;  %v425_v32 = vsel %vm411_vm4, %v3067_v20, %v2427_v11 }
 0x14f   : > { %v1917_v2 = vsel %vm243_vm3, %v3603_v10, %v1916_v3  ;;  %v412_v42 = vsel %vm411_vm4, %v3063_v17, %v2426_v22  ;;  %v1893_v44 = vsel %vm243_vm3, %v3332_v36, %v1892_v16  ;;  %v1317_v17 = vsel %vm243_vm3, %v1316_v25, %v3606_v6 }
 0x150   : > { %v3598_v31 = vpop.permute.xlu1 %2399  ;;  %2534 = vrot.lane.b32.xlu2 %v2533_v33, %s2687_s23  ;;  %v3627_v24 = vperm.slane %v1917_v2, %v2774_v54  ;;  %v3643_v36 = vperm.slane %v1905_v19, %v2752_v34  ;;  %v1373_v22 = vsel %vm243_vm3, %v1372_v38, %v3610_v43  ;;  %v488_v25 = vrot.slane %v3245_v40, 4 }
 0x151   : > { %4496 = vst [vmem:[#allocation29_spill] sm:$0xff] %v3598_v31  ;;  %v2390_v0 = vpop.permute.xlu0 %2389  ;;  %v1973_v31 = vsel %vm243_vm3, %v3549_v58, %v1972_v39  ;;  %v4497_v39 = vrot.slane %v3475_v12, 4  ;;  %v750_v19 = vrot.slane %v3312_v15, 4  ;;  %v1983_v38 = vsel %vm243_vm3, %v1982_v9, %v3613_v55 }
 0x152   : > { %v2392_v41 = vunpack.i.h.bf16 %v2390_v0  ;;  %v2391_v47 = vunpack.i.l.bf16 %v2390_v0  ;;  %v3638_v3 = vperm.slane %v1973_v31, %v2774_v54  ;;  %2007 = vrot.lane.b32.xlu0 %v3627_v24, %s2687_s23  ;;  %v4498_v31 = vrot.slane %v3479_v8, 4 }
 0x153   : > { %v1721_v16 = vsel %vm243_vm3, %v4497_v39, %v3506_v61  ;;  %v1901_v0 = vperm.slane %v1893_v44, %v2752_v34  ;;  %v3669_v2 = vperm.slane %v1317_v17, %v2774_v54  ;;  %v3672_v40 = vperm.slane %v1373_v22, %v2774_v54 }
 0x154   : > { %v3632_v20 = vsel %vm413_vm5, %v425_v32, %v2392_v41  ;;  %v3635_v11 = vsel %vm413_vm5, %v412_v42, %v2391_v47  ;;  %v1777_v33 = vsel %vm243_vm3, %v4498_v31, %v3509_v52  ;;  %2035 = vrot.lane.b32.xlu1 %v3638_v3, %s2687_s23  ;;  %v694_v32 = vrot.slane %v3305_v29, 4 }
 0x155   : > { %v3676_v15 = vperm.slane %v1721_v16, %v2774_v54  ;;  %v3679_v42 = vperm.slane %v1777_v33, %v2774_v54  ;;  %v4499_v29 = vrot.slane %v3506_v61, 4  ;;  %v2397_v44 = vunpack.i.h.bf16 %v3445_v56 }
 0x156   : > { %v1926_v17 = vrot.slane %v3643_v36, 4  ;;  %v3688_v22 = vperm.slane %v1983_v38, %v2774_v54  ;;  %v4500_v16 = vrot.slane %v3509_v52, 4  ;;  %v2396_v33 = vunpack.i.l.bf16 %v3445_v56 }
 0x157   : > { %v1723_v9 = vsel %vm243_vm3, %v3475_v12, %v4499_v29  ;;  %v1928_v61 = vrot.slane %v1901_v0, 4  ;;  %v514_v41 = vrot.slane %v3296_v60, 4  ;;  %v570_v12 = vrot.slane %v3309_v45, 4 }
 0x158   : > { %v3666_v47 = vpop.permute.xlu1 %2409  ;;  %v1779_v31 = vsel %vm243_vm3, %v3479_v8, %v4500_v16  ;;  %2043 = vrot.lane.b32.xlu2 %v3688_v22, %s2686_s22  ;;  %v2543_v38 = vpack.i.bf16 %v3672_v40, %v3669_v2  ;;  %v3704_v29 = vperm.slane %v1723_v9, %v2774_v54  ;;  %v1927_v52 = vsel %vm243_vm3, %v1926_v17, %v1901_v0 }
 0x159   : > { %v3690_v39 = vpop.permute.xlu0 %2414  ;;  %v2538_v56 = vpack.i.bf16 %v3679_v42, %v3676_v15  ;;  %v3710_v8 = vperm.slane %v1779_v31, %v2774_v54  ;;  %v695_v60 = vsel %vm243_vm3, %v694_v32, %v3234_v50  ;;  %v515_v45 = vsel %vm243_vm3, 0.0, %v514_v41 }
 0x15a   : > { %2544 = vrot.lane.b32.xlu0 %v2543_v38, %s2686_s22  ;;  %v3717_v9 = vperm.slane %v695_v60, %v2774_v54  ;;  %v751_v0 = vsel %vm243_vm3, %v750_v19, %v3237_v51  ;;  %v489_v17 = vsel %vm243_vm3, %v488_v25, %v3202_v27  ;;  %v571_v16 = vsel %vm243_vm3, 0.0, %v570_v12  ;;  %v3741_v12 = vpop.permute.xlu2 %2439 }
 0x15b   : > { %v3726_v31 = vperm.slane %v751_v0, %v2774_v54  ;;  %v3729_v50 = vperm.slane %v489_v17, %v2774_v54  ;;  %v4504_v32 = vrot.slane %v3257_v35, 4  ;;  %v516_v25 = vrot.slane %v3290_v1, 4 }
 0x15c   : > { %4501 = vst [vmem:[#allocation30_spill] sm:$0xff] %v3717_v9  ;;  %2539 = vrot.lane.b32.xlu1 %v2538_v56, %s2686_s22  ;;  %v718_v51 = vrot.slane %v3717_v9, 4  ;;  %v572_v19 = vrot.slane %v3293_v7, 4  ;;  %v724_v7 = vrot.slane %v3372_v59, 4  ;;  %v2558_v34 = vpack.i.bf16 %v571_v16, %v515_v45 }
 0x15d   : > { %4502 = vst [vmem:[#allocation31_spill] sm:$0xff] %v3726_v31  ;;  %v545_v41 = vsel %vm243_vm3, %v4504_v32, %v3197_v57  ;;  %v774_v0 = vrot.slane %v3726_v31, 4  ;;  %v512_v35 = vrot.slane %v3729_v50, 4  ;;  %v2548_v57 = vpack.i.bf16 %v3710_v8, %v3704_v29 }
 0x15e   : > { %4503 = vst [vmem:[#allocation32_spill] sm:$0xff] %v3729_v50  ;;  %v3737_v27 = vperm.slane %v545_v41, %v2774_v54  ;;  %v3750_v32 = vperm.slane %v1927_v52, %v2774_v54  ;;  %v1929_v50 = vsel %vm243_vm3, %v3643_v36, %v1928_v61  ;;  %v3771_v45 = vsel %vm243_vm3, 0.0, %v572_v19 }
 0x15f   : > { %v775_v59 = vsel %vm243_vm3, 0.0, %v774_v0  ;;  %v513_v31 = vsel %vm243_vm3, 0.0, %v512_v35  ;;  %v2407_v36 = vunpack.i.h.bf16 %v3494_v48  ;;  %v780_v61 = vrot.slane %v3375_v14, 4 }
 0x160   : > { %v2430_v38 = vpop.permute.xlu1 %2429  ;;  %4505 = vst [vmem:[#allocation33_spill] sm:$0xff] %v3737_v27  ;;  %v568_v1 = vrot.slane %v3737_v27, 4  ;;  %2549 = vrot.lane.b32.xlu2 %v2548_v57, %s2685_s21  ;;  %v719_v27 = vsel %vm243_vm3, 0.0, %v718_v51  ;;  %v2406_v16 = vunpack.i.l.bf16 %v3494_v48  ;;  %v720_v51 = vrot.slane %v3345_v23, 4 }
 0x161   : > { %v2432_v56 = vunpack.i.h.bf16 %v2430_v38  ;;  %v2431_v60 = vunpack.i.l.bf16 %v2430_v38  ;;  %v3747_v17 = vpop.permute.xlu0 %2419  ;;  %v3790_v0 = vsel %vm243_vm3, 0.0, %v780_v61  ;;  %v518_v57 = vrot.slane %v3252_v62, 4  ;;  %v4509_v62 = vld [vmem:[#allocation7_spill] sm:$0xff] }
 0x162   : > { %2559 = vrot.lane.b32.xlu0 %v2558_v34, %s2688_s24  ;;  %v3787_v34 = vperm.slane %v1929_v50, %v2774_v54  ;;  %v3796_v23 = vsel %vm243_vm3, 0.0, %v720_v51  ;;  %v4511_v51 = vrot.slane %v3350_v26, 4 }
 0x163   : > { %v416_v41 = vsel %vm415_vm6, %v3635_v11, %v2431_v60  ;;  %v427_v38 = vsel %vm415_vm6, %v3632_v20, %v2432_v56  ;;  %v569_v11 = vsel %vm243_vm3, 0.0, %v568_v1  ;;  %v3768_v20 = vsel %vm243_vm3, 0.0, %v516_v25 }
 0x164   : > { %v418_v9 = vsel %vm417_vm7, %v416_v41, %v2396_v33  ;;  %v428_v52 = vsel %vm417_vm7, %v427_v38, %v2397_v44  ;;  %v2563_v44 = vpack.i.bf16 %v3771_v45, %v3768_v20  ;;  %v3778_v33 = vsel %vm243_vm3, 0.0, %v724_v7  ;;  %2015 = vrot.lane.b32.xlu1 %v3750_v32, %s2686_s22  ;;  %4506 = vst [vmem:[#allocation34_spill] sm:$0xff] %v3787_v34  ;;  %v3806_v7 = vpop.permute.xlu2 %2454  ;;  %v4508_v41 = vld [vmem:[#allocation8_spill] sm:$0xff] }
 0x165   : > { %v776_v25 = vrot.slane %v3357_v63, 4  ;;  %v2573_v56 = vpack.i.bf16 %v775_v59, %v719_v27  ;;  %v2553_v60 = vpack.i.bf16 %v569_v11, %v513_v31  ;;  %v2588_v48 = vpack.i.bf16 %v3790_v0, %v3778_v33 }
 0x166   : > { %v4507_v31 = vrot.slane %v3360_v13, 4  ;;  %v722_v27 = vrot.slane %v3386_v37, 4  ;;  %v4510_v37 = vld [vmem:[#allocation12_spill] sm:$0xff] }
 0x167   : > { %v3799_v63 = vsel %vm243_vm3, 0.0, %v776_v25  ;;  %v1155_v25 = vsel %vm243_vm3, %v4511_v51, %v4510_v37  ;;  %v4520_v51 = vld [vmem:[#allocation18_spill] sm:$0xff] }
 0x168   : > { %v2445_v19 = vpop.permute.xlu1 %2444  ;;  %v1099_v50 = vsel %vm243_vm3, %v4507_v31, %v3318_v46  ;;  %2023 = vrot.lane.b32.xlu2 %v3787_v34, %s2685_s21  ;;  %v4515_v31 = vld [vmem:[#allocation14_spill] sm:$0xff] }
 0x169   : > { %v2447_v14 = vunpack.i.h.bf16 %v2445_v19  ;;  %v2446_v35 = vunpack.i.l.bf16 %v2445_v19  ;;  %v2435_v1 = vpop.permute.xlu0 %2434 }
 0x16a   : > { %v2437_v11 = vunpack.i.h.bf16 %v2435_v1  ;;  %v2436_v33 = vunpack.i.l.bf16 %v2435_v1  ;;  %2574 = vrot.lane.b32.xlu0 %v2573_v56, %s2689_s25  ;;  %v4514_v1 = vld [vmem:[#allocation13_spill] sm:$0xff] }
 0x16b   : > { %v1035_v38 = vsel %vm411_vm4, %v4508_v41, %v2447_v14  ;;  %v1028_v59 = vsel %vm411_vm4, %v4509_v62, %v2446_v35  ;;  %v4512_v14 = vld [vmem:[#allocation11_spill] sm:$0xff]  ;;  %v778_v26 = vrot.slane %v4514_v1, 4  ;;  %v1124_v41 = vrot.slane %v4515_v31, 4  ;;  %v4518_v62 = vld [vmem:[#allocation16_spill] sm:$0xff] }
 0x16c   : > { %v1029_v61 = vsel %vm413_vm5, %v1028_v59, %v2406_v16  ;;  %v1036_v13 = vsel %vm413_vm5, %v1035_v38, %v2407_v36  ;;  %v3823_v19 = vsel %vm419_vm8, %v418_v9, %v2436_v33  ;;  %v3826_v0 = vsel %vm419_vm8, %v428_v52, %v2437_v11  ;;  %v4516_v38 = vld [vmem:[#allocation15_spill] sm:$0xff]  ;;  %2554 = vrot.lane.b32.xlu1 %v2553_v60, %s2689_s25  ;;  %v2475_v46 = vpop.permute.xlu2 %2474 }
 0x16d   : > { %v574_v35 = vrot.slane %v4512_v14, 4  ;;  %v3830_v16 = vperm.slane %v1099_v50, %v2774_v54  ;;  %v3834_v36 = vsel %vm243_vm3, 0.0, %v722_v27  ;;  %v1180_v9 = vrot.slane %v4516_v38, 4  ;;  %v4519_v50 = vld [vmem:[#allocation17_spill] sm:$0xff] }
 0x16e   : > { %v3841_v52 = vperm.slane %v1155_v25, %v2774_v54  ;;  %v1128_v59 = vrot.slane %v4518_v62, 4  ;;  %v1184_v11 = vrot.slane %v4519_v50, 4  ;;  %v3848_v56 = vsel %vm243_vm3, 0.0, %v778_v26 }
 0x16f   : > { %4513 = vst [vmem:[#allocation8_spill] sm:$0xff] %v3830_v16  ;;  %v3851_v27 = vsel %vm243_vm3, 0.0, %v1124_v41  ;;  %v3854_v37 = vsel %vm243_vm3, 0.0, %v1180_v9  ;;  %v1126_v60 = vrot.slane %v4520_v51, 4  ;;  %v1708_v25 = vrot.slane %v3498_v49, 4 }
 0x170   : > { %4517 = vst [vmem:[#allocation7_spill] sm:$0xff] %v3841_v52  ;;  %v3845_v33 = vpop.permute.xlu1 %2459  ;;  %v519_v14 = vsel %vm243_vm3, 0.0, %v518_v57  ;;  %v575_v1 = vsel %vm243_vm3, 0.0, %v574_v35  ;;  %v2583_v31 = vpack.i.bf16 %v3848_v56, %v3834_v36  ;;  %v1122_v26 = vrot.slane %v3830_v16, 4  ;;  %2564 = vrot.lane.b32.xlu2 %v2563_v44, %s2691_s27 }
 0x171   : > { %v2450_v38 = vpop.permute.xlu0 %2449  ;;  %v3866_v9 = vsel %vm243_vm3, 0.0, %v1128_v59  ;;  %v3869_v62 = vsel %vm243_vm3, 0.0, %v1184_v11  ;;  %v1178_v57 = vrot.slane %v3841_v52, 4  ;;  %v2412_v36 = vunpack.i.h.bf16 %v3666_v47  ;;  %v4521_v11 = vld [vmem:[#allocation19_spill] sm:$0xff] }
 0x172   : > { %v2452_v49 = vunpack.i.h.bf16 %v2450_v38  ;;  %v2451_v50 = vunpack.i.l.bf16 %v2450_v38  ;;  %v2411_v56 = vunpack.i.l.bf16 %v3666_v47  ;;  %v3881_v59 = vsel %vm243_vm3, 0.0, %v1126_v60  ;;  %v4522_v38 = vld [vmem:[#allocation22_spill] sm:$0xff]  ;;  %2589 = vrot.lane.b32.xlu0 %v2588_v48, %s2690_s26 }
 0x173   : > { %v1182_v51 = vrot.slane %v4521_v11, 4  ;;  %v1764_v41 = vrot.slane %v4522_v38, 4  ;;  %v2568_v52 = vpack.i.bf16 %v575_v1, %v519_v14  ;;  %v1123_v45 = vsel %vm243_vm3, 0.0, %v1122_v26  ;;  %v4523_v1 = vld [vmem:[#allocation20_spill] sm:$0xff]  ;;  %v4526_v11 = vld [vmem:[#allocation10_spill] sm:$0xff] }
 0x174   : > { %v1037_v16 = vsel %vm415_vm6, %v1036_v13, %v2452_v49  ;;  %v1030_v35 = vsel %vm415_vm6, %v1029_v61, %v2451_v50  ;;  %v1179_v44 = vsel %vm243_vm3, 0.0, %v1178_v57  ;;  %v1360_v13 = vrot.slane %v3545_v18, 4  ;;  %v4525_v26 = vld [vmem:[#allocation24_spill] sm:$0xff] }
 0x175   : > { %v3888_v47 = vsel %vm417_vm7, %v1037_v16, %v2412_v36  ;;  %v3891_v34 = vsel %vm417_vm7, %v1030_v35, %v2411_v56  ;;  %v3895_v20 = vsel %vm243_vm3, 0.0, %v1182_v51  ;;  %2569 = vrot.lane.b32.xlu1 %v2568_v52, %s2690_s26  ;;  %v1304_v16 = vrot.slane %v3555_v53, 4  ;;  %v4524_v35 = vld [vmem:[#allocation21_spill] sm:$0xff] }
 0x176   : > { %v2603_v61 = vpack.i.bf16 %v3895_v20, %v3881_v59  ;;  %v2477_v60 = vunpack.i.h.bf16 %v2475_v46  ;;  %v1709_v48 = vsel %vm243_vm3, %v1708_v25, %v4523_v1  ;;  %v1765_v52 = vsel %vm243_vm3, %v1764_v41, %v4524_v35  ;;  %v4527_v51 = vld [vmem:[#allocation9_spill] sm:$0xff] }
 0x177   : > { %v1734_v36 = vrot.slane %v4525_v26, 4  ;;  %v2476_v57 = vunpack.i.l.bf16 %v2475_v46  ;;  %v2422_v56 = vunpack.i.h.bf16 %v3747_v17  ;;  %v2421_v59 = vunpack.i.l.bf16 %v3747_v17  ;;  %v4528_v20 = vld [vmem:[#allocation25_spill] sm:$0xff] }
 0x178   : > { %v2465_v14 = vpop.permute.xlu1 %2464  ;;  %v2593_v18 = vpack.i.bf16 %v1179_v44, %v1123_v45  ;;  %v3916_v25 = vperm.slane %v1709_v48, %v2774_v54  ;;  %v4529_v46 = vpack.i.bf16 %v3799_v63, %v3796_v23  ;;  %v3926_v45 = vperm.slane %v1765_v52, %v2774_v54  ;;  %v4530_v23 = vld [vmem:[#allocation28_spill] sm:$0xff] }
 0x179   : > { %v2467_v49 = vunpack.i.h.bf16 %v2465_v14  ;;  %v2466_v50 = vunpack.i.l.bf16 %v2465_v14  ;;  %v1790_v14 = vrot.slane %v4528_v20, 4  ;;  %v1305_v44 = vsel %vm243_vm3, %v1304_v16, %v3568_v4 }
 0x17a   : > { %2579 = vrot.lane.b32.xlu2 %v4529_v46, %s2688_s24  ;;  %2594 = vrot.lane.b32.xlu0 %v2593_v18, %s2689_s25  ;;  %v1361_v63 = vsel %vm243_vm3, %v1360_v13, %v4530_v23  ;;  %v1914_v35 = vrot.slane %v3603_v10, 4  ;;  %v3942_v4 = vperm.slane %v1305_v44, %v2774_v54  ;;  %v1386_v16 = vrot.slane %v3596_v5, 4 }
 0x17b   : > { %v1645_v53 = vsel %vm411_vm4, %v4526_v11, %v2467_v49  ;;  %v1638_v38 = vsel %vm411_vm4, %v4527_v51, %v2466_v50  ;;  %v3933_v49 = vsel %vm243_vm3, 0.0, %v1734_v36  ;;  %v1330_v50 = vrot.slane %v3593_v28, 4 }
 0x17c   : > { %v1639_v41 = vsel %vm413_vm5, %v1638_v38, %v2421_v59  ;;  %v1646_v17 = vsel %vm413_vm5, %v1645_v53, %v2422_v56  ;;  %v1732_v26 = vrot.slane %v3916_v25, 4  ;;  %v1788_v36 = vrot.slane %v3926_v45, 4 }
 0x17d   : > { %v1640_v1 = vsel %vm415_vm6, %v1639_v41, %v2476_v57  ;;  %v1647_v48 = vsel %vm415_vm6, %v1646_v17, %v2477_v60  ;;  %2584 = vrot.lane.b32.xlu1 %v2583_v31, %s2691_s27  ;;  %v3946_v60 = vsel %vm243_vm3, 0.0, %v1790_v14  ;;  %v1331_v13 = vsel %vm243_vm3, 0.0, %v1330_v50 }
 0x17e   : > { %v2623_v28 = vpack.i.bf16 %v3946_v60, %v3933_v49  ;;  %v3954_v57 = vperm.slane %v1361_v63, %v2774_v54  ;;  %v1387_v5 = vsel %vm243_vm3, 0.0, %v1386_v16  ;;  %v1374_v56 = vrot.slane %v3610_v43, 4 }
 0x17f   : > { %v1318_v59 = vrot.slane %v3606_v6, 4  ;;  %v2628_v18 = vpack.i.bf16 %v1387_v5, %v1331_v13  ;;  %v1328_v51 = vrot.slane %v3942_v4, 4  ;;  %v1915_v38 = vsel %vm243_vm3, %v1914_v35, %v3585_v21 }
 0x180   : > { %v2470_v52 = vpop.permute.xlu1 %2469  ;;  %v4531_v20 = vpack.i.bf16 %v3854_v37, %v3851_v27  ;;  %v1738_v43 = vrot.slane %v3704_v29, 4  ;;  %v1970_v6 = vrot.slane %v3549_v58, 4  ;;  %v1733_v14 = vsel %vm243_vm3, 0.0, %v1732_v26 }
 0x181   : > { %v2472_v10 = vunpack.i.h.bf16 %v2470_v52  ;;  %v2471_v31 = vunpack.i.l.bf16 %v2470_v52  ;;  %v1789_v46 = vsel %vm243_vm3, 0.0, %v1788_v36  ;;  %v1384_v41 = vrot.slane %v3954_v57, 4 }
 0x182   : > { %2599 = vrot.lane.b32.xlu2 %v4531_v20, %s2688_s24  ;;  %v4532_v17 = vpack.i.bf16 %v3869_v62, %v3866_v9  ;;  %v3982_v21 = vperm.slane %v1915_v38, %v2774_v54  ;;  %v3985_v27 = vsel %vm243_vm3, 0.0, %v1738_v43  ;;  %v1794_v29 = vrot.slane %v3710_v8, 4  ;;  %v4534_v62 = vld [vmem:[#allocation23_spill] sm:$0xff]  ;;  %v4040_v43 = vpop.permute.xlu2 %2484 }
 0x183   : > { %v3960_v11 = vsel %vm417_vm7, %v1640_v1, %v2471_v31  ;;  %v3963_v53 = vsel %vm417_vm7, %v1647_v48, %v2472_v10  ;;  %v1332_v58 = vrot.slane %v3669_v2, 4  ;;  %v1329_v37 = vsel %vm243_vm3, 0.0, %v1328_v51  ;;  %v4533_v1 = vld [vmem:[#allocation26_spill] sm:$0xff] }
 0x184   : > { %2609 = vrot.lane.b32.xlu0 %v4532_v17, %s2690_s26  ;;  %v1388_v44 = vrot.slane %v3672_v40, 4  ;;  %v1319_v9 = vsel %vm243_vm3, %v4533_v1, %v1318_v59  ;;  %v1375_v48 = vsel %vm243_vm3, %v4534_v62, %v1374_v56  ;;  %v1971_v23 = vsel %vm243_vm3, %v1970_v6, %v3578_v30 }
 0x185   : > { %2604 = vrot.lane.b32.xlu1 %v2603_v61, %s2691_s27  ;;  %v3999_v63 = vsel %vm243_vm3, 0.0, %v1794_v29  ;;  %v4002_v2 = vsel %vm243_vm3, 0.0, %v1332_v58  ;;  %v4005_v8 = vperm.slane %v1319_v9, %v2774_v54  ;;  %v1385_v40 = vsel %vm243_vm3, 0.0, %v1384_v41  ;;  %v4535_v29 = vld [vmem:[#allocation29_spill] sm:$0xff] }
 0x186   : > { %v2643_v61 = vpack.i.bf16 %v3999_v63, %v3985_v27  ;;  %v4011_v50 = vsel %vm243_vm3, 0.0, %v1388_v44  ;;  %v4014_v35 = vperm.slane %v1375_v48, %v2774_v54  ;;  %v2613_v30 = vpack.i.bf16 %v1789_v46, %v1733_v14  ;;  %v2480_v48 = vpop.permute.xlu0 %2479 }
 0x187   : > { %v1938_v16 = vrot.slane %v3982_v21, 4  ;;  %v2638_v52 = vpack.i.bf16 %v4011_v50, %v4002_v2  ;;  %v1334_v26 = vrot.slane %v4005_v8, 4  ;;  %v4021_v36 = vperm.slane %v1971_v23, %v2774_v54 }
 0x188   : > { %v2648_v13 = vpack.i.bf16 %v4014_v35, %v4005_v8  ;;  %v1390_v10 = vrot.slane %v4014_v35, 4  ;;  %v2618_v31 = vpack.i.bf16 %v1385_v40, %v1329_v37  ;;  %v1996_v20 = vrot.slane %v3638_v3, 4 }
 0x189   : > { %v4028_v5 = vsel %vm243_vm3, 0.0, %v1334_v26  ;;  %v1939_v59 = vsel %vm243_vm3, 0.0, %v1938_v16  ;;  %v1994_v38 = vrot.slane %v4021_v36, 4  ;;  %v1736_v46 = vrot.slane %v3676_v15, 4 }
 0x18a   : > { %2614 = vrot.lane.b32.xlu2 %v2613_v30, %s2689_s25  ;;  %v4031_v56 = vsel %vm243_vm3, 0.0, %v1390_v10  ;;  %v1997_v14 = vsel %vm243_vm3, 0.0, %v1996_v20  ;;  %v1792_v41 = vrot.slane %v3679_v42, 4  ;;  %v2401_v58 = vunpack.i.l.bf16 %v4535_v29  ;;  %v4056_v42 = vpop.permute.xlu2 %2509 }
 0x18b   : > { %v2658_v51 = vpack.i.bf16 %v4031_v56, %v4028_v5  ;;  %v1995_v6 = vsel %vm243_vm3, 0.0, %v1994_v38  ;;  %v1737_v17 = vsel %vm243_vm3, 0.0, %v1736_v46  ;;  %v1998_v37 = vrot.slane %v3688_v22, 4 }
 0x18c   : > { %2619 = vrot.lane.b32.xlu0 %v2618_v31, %s2689_s25  ;;  %v1793_v3 = vsel %vm243_vm3, 0.0, %v1792_v41  ;;  %v2402_v44 = vunpack.i.h.bf16 %v4535_v29  ;;  %v2441_v1 = vunpack.i.l.bf16 %v3741_v12  ;;  %v2442_v15 = vunpack.i.h.bf16 %v3741_v12 }
 0x18d   : > { %2003 = vrot.lane.b32.xlu1 %v1939_v59, %s2689_s25  ;;  %v422_v9 = vsel %vm421_vm9, %v3823_v19, %v2401_v58  ;;  %v1999_v12 = vsel %vm243_vm3, 0.0, %v1998_v37  ;;  %v1940_v49 = vrot.slane %v3627_v24, 4  ;;  %v1942_v19 = vrot.slane %v3750_v32, 4  ;;  %v4542_v37 = vld [vmem:[#allocation5_spill] sm:$0xff] }
 0x18e   : > { %v4065_v22 = vsel %vm423_vm10, %v422_v9, %v2441_v1  ;;  %v430_v62 = vsel %vm421_vm9, %v3826_v0, %v2402_v44  ;;  %v2457_v60 = vunpack.i.h.bf16 %v3806_v7  ;;  %v1984_v40 = vrot.slane %v3613_v55, 4 }
 0x18f   : > { %v4072_v23 = vsel %vm423_vm10, %v430_v62, %v2442_v15  ;;  %v1941_v0 = vsel %vm243_vm3, 0.0, %v1940_v49  ;;  %v2417_v30 = vunpack.i.h.bf16 %v3690_v39  ;;  %v2416_v16 = vunpack.i.l.bf16 %v3690_v39 }
 0x190   : > { %v2462_v26 = vunpack.i.h.bf16 %v3845_v33  ;;  %v2461_v24 = vunpack.i.l.bf16 %v3845_v33  ;;  %v1943_v32 = vsel %vm243_vm3, 0.0, %v1942_v19  ;;  %v2482_v46 = vunpack.i.h.bf16 %v2480_v48 }
 0x191   : > { %v2481_v2 = vunpack.i.l.bf16 %v2480_v48 }
 0x192   : > { %2031 = vrot.lane.b32.xlu2 %v1995_v6, %s2689_s25  ;;  %v4091_v31 = vpop.permute.xlu2 %2524 }
 0x193   : > { %v4093_v55 = vpop.permute.xlu0 %2494 }
 0x194   : > { %2039 = vrot.lane.b32.xlu0 %v1997_v14, %s2688_s24 }
 0x195   : > { %2629 = vrot.lane.b32.xlu1 %v2628_v18, %s2688_s24  ;;  %v2633_v18 = vpack.i.bf16 %v1793_v3, %v1737_v17  ;;  %v4133_v17 = vsel %vm419_vm8, %v3960_v11, %v2481_v2  ;;  %v4137_v3 = vsel %vm419_vm8, %v3963_v53, %v2482_v46  ;;  %v4541_v53 = vld [vmem:[#allocation6_spill] sm:$0xff] }
 0x196   : > { %v4115_v6 = vpop.permute.xlu1 %2489  ;;  %v4543_v44 = vpack.i.bf16 %v4541_v53, %v4542_v37 }
 0x19a   : > { %2624 = vrot.lane.b32.xlu2 %v2623_v28, %s2688_s24  ;;  %v2456_v28 = vunpack.i.l.bf16 %v3806_v7  ;;  %v1039_v7 = vsel %vm419_vm8, %v3888_v47, %v2457_v60  ;;  %v4536_v47 = vld [vmem:[#allocation27_spill] sm:$0xff]  ;;  %v2487_v60 = vunpack.i.h.bf16 %v4040_v43 }
 0x19b   : > { %v1040_v59 = vsel %vm421_vm9, %v1039_v7, %v2417_v30  ;;  %v1985_v38 = vsel %vm243_vm3, %v4536_v47, %v1984_v40 }
 0x19c   : > { %2634 = vrot.lane.b32.xlu0 %v2633_v18, %s2691_s27  ;;  %v1032_v10 = vsel %vm419_vm8, %v3891_v34, %v2456_v28  ;;  %v4106_v33 = vsel %vm423_vm10, %v1040_v59, %v2462_v26  ;;  %v1993_v20 = vperm.slane %v1985_v38, %v2774_v54  ;;  %v4538_v54 = vld [vmem:[#allocation4_spill] sm:$0xff]  ;;  %v2486_v28 = vunpack.i.l.bf16 %v4040_v43  ;;  %v4545_v43 = vld [vmem:[#allocation30_spill] sm:$0xff] }
 0x19d   : > { %2047 = vrot.lane.b32.xlu1 %v1999_v12, %s2691_s27  ;;  %v1033_v39 = vsel %vm421_vm9, %v1032_v10, %v2416_v16 }
 0x19e   : > { %v4103_v34 = vsel %vm423_vm10, %v1033_v39, %v2461_v24  ;;  %v2000_v50 = vrot.slane %v1993_v20, 4  ;;  %v2500_v29 = vpop.permute.xlu1 %2499 }
 0x19f   : > { %v2501_v40 = vunpack.i.l.bf16 %v2500_v29 }
 0x1a2   : > { %2011 = vrot.lane.b32.xlu2 %v1941_v0, %s2688_s24  ;;  %v4117_v27 = vpop.permute.xlu0 %2504  ;;  %v2502_v0 = vunpack.i.h.bf16 %v2500_v29 }
 0x1a3   : > { %v2507_v16 = vunpack.i.h.bf16 %v4117_v27  ;;  %v2506_v26 = vunpack.i.l.bf16 %v4117_v27  ;;  %v4546_v27 = vld [vmem:[#allocation33_spill] sm:$0xff] }
 0x1a4   : > { %2019 = vrot.lane.b32.xlu0 %v1943_v32, %s2691_s27 }
 0x1a5   : > { %2644 = vrot.lane.b32.xlu1 %v2643_v61, %s2690_s26  ;;  %v4537_v61 = vld [vmem:[#allocation34_spill] sm:$0xff] }
 0x1a6   : > { %v1944_v14 = vrot.slane %v4537_v61, 4  ;;  %v4159_v15 = vpop.permute.xlu1 %2514  ;;  %v4544_v61 = vld [vmem:[#allocation31_spill] sm:$0xff] }
 0x1a8   : > { %v1945_v8 = vsel %vm243_vm3, 0.0, %v1944_v14 }
 0x1aa   : > { %2639 = vrot.lane.b32.xlu2 %v2638_v52, %s2691_s27  ;;  %v4119_v63 = vpop.permute.xlu2 %2534  ;;  %v4539_v52 = vld [vmem:[#allocation3_spill] sm:$0xff]  ;;  %v4145_v58 = vpop.permute.xlu0 %2519 }
 0x1ab   : > { %v4540_v41 = vpack.i.bf16 %v4538_v54, %v4539_v52  ;;  %v4547_v52 = vld [vmem:[#allocation32_spill] sm:$0xff] }
 0x1ac   : > { %2051 = vrot.lane.b32.xlu0 %v1993_v20, %s2685_s21 }
 0x1ad   : > { %2649 = vrot.lane.b32.xlu1 %v2648_v13, %s2685_s21  ;;  %v2001_v13 = vsel %vm243_vm3, 0.0, %v2000_v50 }
 0x1b2   : > { %2654 = vrot.lane.b32.xlu2 %v4540_v41, %s2685_s21  ;;  %v4140_v35 = vpop.permute.xlu2 %2043 }
 0x1b4   : > { %2027 = vrot.lane.b32.xlu0 %v1945_v8, %s2690_s26 }
 0x1b5   : > { %2055 = vrot.lane.b32.xlu1 %v2001_v13, %s2690_s26  ;;  %v4157_v1 = vpop.permute.xlu0 %2529 }
 0x1ba   : > { %2659 = vrot.lane.b32.xlu2 %v2658_v51, %s2690_s26  ;;  %v4151_v11 = vpop.permute.xlu2 %2549 }
 0x1bc   : > { %2664 = vrot.lane.b32.xlu0 %v4543_v44, %s2690_s26 }
 0x1c2   : > { %v4161_v18 = vpop.permute.xlu2 %2023 }
 0x1c4   : > { %v4163_v9 = vpop.permute.xlu0 %2007 }
 0x1c6   : > { %v4165_v62 = vpop.permute.xlu1 %2035 }
 0x1ca   : > { %v4167_v48 = vpop.permute.xlu2 %2564 }
 0x1cc   : > { %v4169_v5 = vpop.permute.xlu0 %2544 }
 0x1ce   : > { %v4171_v56 = vpop.permute.xlu1 %2539 }
 0x1d4   : > { %v2580_v51 = vpop.permute.xlu2 %2579  ;;  %v2560_v12 = vpop.permute.xlu0 %2559 }
 0x1d5   : > { %v2582_v7 = vunpack.i.h.bf16 %v2580_v51  ;;  %v2581_v39 = vunpack.i.l.bf16 %v2580_v51  ;;  %v2562_v38 = vunpack.i.h.bf16 %v2560_v12  ;;  %v2561_v20 = vunpack.i.l.bf16 %v2560_v12 }
 0x1d6   : > { %v4173_v49 = vpop.permute.xlu1 %2015 }
 0x1dc   : > { %v2600_v19 = vpop.permute.xlu2 %2599  ;;  %v2575_v30 = vpop.permute.xlu0 %2574 }
 0x1dd   : > { %v2577_v24 = vunpack.i.h.bf16 %v2575_v30  ;;  %v2576_v32 = vunpack.i.l.bf16 %v2575_v30  ;;  %v2517_v30 = vunpack.i.h.bf16 %v4159_v15 }
 0x1de   : > { %v2555_v10 = vpop.permute.xlu1 %2554 }
 0x1df   : > { %v2557_v59 = vunpack.i.h.bf16 %v2555_v10  ;;  %v2556_v47 = vunpack.i.l.bf16 %v2555_v10  ;;  %v845_v14 = vsel %vm411_vm4, %v4544_v61, %v2577_v24  ;;  %v838_v46 = vsel %vm411_vm4, %v4545_v43, %v2576_v32  ;;  %v4548_v43 = vld [vmem:[#allocation7_spill] sm:$0xff] }
 0x1e0   : > { %v846_v2 = vsel %vm413_vm5, %v845_v14, %v2502_v0  ;;  %v839_v50 = vsel %vm413_vm5, %v838_v46, %v2501_v40  ;;  %v2516_v24 = vunpack.i.l.bf16 %v4159_v15  ;;  %v2602_v61 = vunpack.i.h.bf16 %v2600_v19 }
 0x1e1   : > { %v639_v54 = vsel %vm411_vm4, %v4546_v27, %v2557_v59  ;;  %v632_v41 = vsel %vm411_vm4, %v4547_v52, %v2556_v47  ;;  %v840_v29 = vsel %vm415_vm6, %v839_v50, %v2581_v39  ;;  %v847_v53 = vsel %vm415_vm6, %v846_v2, %v2582_v7  ;;  %v4549_v2 = vld [vmem:[#allocation8_spill] sm:$0xff] }
 0x1e2   : > { %v640_v8 = vsel %vm413_vm5, %v639_v54, %v2487_v60  ;;  %v633_v13 = vsel %vm413_vm5, %v632_v41, %v2486_v28  ;;  %v841_v12 = vsel %vm417_vm7, %v840_v29, %v2506_v26  ;;  %v848_v0 = vsel %vm417_vm7, %v847_v53, %v2507_v16 }
 0x1e3   : > { %v4194_v37 = vsel %vm415_vm6, %v640_v8, %v2562_v38  ;;  %v4197_v44 = vsel %vm415_vm6, %v633_v13, %v2561_v20  ;;  %v2522_v26 = vunpack.i.h.bf16 %v4145_v58  ;;  %v2521_v16 = vunpack.i.l.bf16 %v4145_v58 }
 0x1e4   : > { %v2615_v51 = vpop.permute.xlu2 %2614  ;;  %v4201_v40 = vpop.permute.xlu0 %2589  ;;  %v2601_v14 = vunpack.i.l.bf16 %v2600_v19  ;;  %v2532_v13 = vunpack.i.h.bf16 %v4157_v1  ;;  %v2531_v29 = vunpack.i.l.bf16 %v4157_v1 }
 0x1e5   : > { %v2617_v10 = vunpack.i.h.bf16 %v2615_v51  ;;  %v2616_v7 = vunpack.i.l.bf16 %v2615_v51 }
 0x1e7   : > { %v4203_v60 = vpop.permute.xlu1 %2569  ;;  %v1859_v58 = vsel %vm411_vm4, %v3926_v45, %v2617_v10  ;;  %v1852_v19 = vsel %vm411_vm4, %v3916_v25, %v2616_v7  ;;  %v2542_v45 = vunpack.i.h.bf16 %v4171_v56  ;;  %v2541_v25 = vunpack.i.l.bf16 %v4171_v56 }
 0x1ec   : > { %v4205_v28 = vpop.permute.xlu2 %2031  ;;  %v2595_v32 = vpop.permute.xlu0 %2594 }
 0x1ed   : > { %v2597_v39 = vunpack.i.h.bf16 %v2595_v32  ;;  %v2596_v59 = vunpack.i.l.bf16 %v2595_v32  ;;  %v1860_v32 = vsel %vm413_vm5, %v1859_v58, %v2532_v13 }
 0x1ef   : > { %v2585_v47 = vpop.permute.xlu1 %2584  ;;  %v1249_v46 = vsel %vm411_vm4, %v4548_v43, %v2597_v39  ;;  %v1242_v15 = vsel %vm411_vm4, %v4549_v2, %v2596_v59 }
 0x1f0   : > { %v2587_v38 = vunpack.i.h.bf16 %v2585_v47  ;;  %v2586_v20 = vunpack.i.l.bf16 %v2585_v47  ;;  %v1250_v50 = vsel %vm413_vm5, %v1249_v46, %v2517_v30  ;;  %v1243_v27 = vsel %vm413_vm5, %v1242_v15, %v2516_v24 }
 0x1f1   : > { %v1244_v41 = vsel %vm415_vm6, %v1243_v27, %v2601_v14  ;;  %v1251_v8 = vsel %vm415_vm6, %v1250_v50, %v2602_v61  ;;  %v1853_v24 = vsel %vm413_vm5, %v1852_v19, %v2531_v29 }
 0x1f2   : > { %v4218_v54 = vsel %vm419_vm8, %v848_v0, %v2587_v38  ;;  %v4221_v52 = vsel %vm419_vm8, %v841_v12, %v2586_v20  ;;  %v1245_v51 = vsel %vm417_vm7, %v1244_v41, %v2521_v16  ;;  %v4233_v12 = vsel %vm417_vm7, %v1251_v8, %v2522_v26 }
 0x1f3   : > { %v2547_v41 = vunpack.i.h.bf16 %v4169_v5 }
 0x1f4   : > { %v2625_v53 = vpop.permute.xlu2 %2624 }
 0x1f5   : > { %v2627_v0 = vunpack.i.h.bf16 %v2625_v53  ;;  %v2626_v30 = vunpack.i.l.bf16 %v2625_v53 }
 0x1f6   : > { %v4239_v10 = vpop.permute.xlu0 %2609 }
 0x1f7   : > { %v1854_v1 = vsel %vm415_vm6, %v1853_v24, %v2626_v30  ;;  %v1861_v7 = vsel %vm415_vm6, %v1860_v32, %v2627_v0  ;;  %v2605_v39 = vpop.permute.xlu1 %2604  ;;  %v2497_v0 = vunpack.i.h.bf16 %v4093_v55  ;;  %v2552_v24 = vunpack.i.h.bf16 %v4151_v11 }
 0x1f8   : > { %v1855_v59 = vsel %vm417_vm7, %v1854_v1, %v2541_v25  ;;  %v1862_v47 = vsel %vm417_vm7, %v1861_v7, %v2542_v45  ;;  %v2606_v30 = vunpack.i.l.bf16 %v2605_v39  ;;  %v2492_v45 = vunpack.i.h.bf16 %v4115_v6 }
 0x1f9   : > { %v2491_v25 = vunpack.i.l.bf16 %v4115_v6  ;;  %v2551_v32 = vunpack.i.l.bf16 %v4151_v11  ;;  %v2567_v1 = vunpack.i.h.bf16 %v4167_v48  ;;  %v2566_v7 = vunpack.i.l.bf16 %v4167_v48 }
 0x1fa   : > { %v2571_v6 = vunpack.i.l.bf16 %v4203_v60  ;;  %v642_v48 = vsel %vm417_vm7, %v4194_v37, %v2492_v45  ;;  %v2527_v37 = vunpack.i.h.bf16 %v4091_v31 }
 0x1fc   : > { %v2012_v38 = vpop.permute.xlu2 %2011 }
 0x1fe   : > { %v2620_v26 = vpop.permute.xlu0 %2619 }
 0x1ff   : > { %v2004_v16 = vpop.permute.xlu1 %2003  ;;  %v2622_v61 = vunpack.i.h.bf16 %v2620_v26  ;;  %v2621_v14 = vunpack.i.l.bf16 %v2620_v26  ;;  %v2607_v26 = vunpack.i.h.bf16 %v2605_v39 }
 0x200   : > { %v2058_v56 = vsel %vm411_vm4, %v3982_v21, %v2004_v16  ;;  %v2537_v21 = vunpack.i.h.bf16 %v4119_v63 }
 0x201   : > { %v2059_v20 = vsel %vm413_vm5, %v2058_v56, %v4163_v9  ;;  %v1455_v2 = vsel %vm411_vm4, %v3954_v57, %v2622_v61  ;;  %v1448_v15 = vsel %vm411_vm4, %v3942_v4, %v2621_v14  ;;  %v2536_v9 = vunpack.i.l.bf16 %v4119_v63 }
 0x202   : > { %v2060_v43 = vsel %vm415_vm6, %v2059_v20, %v2012_v38  ;;  %v1456_v57 = vsel %vm413_vm5, %v1455_v2, %v2537_v21  ;;  %v2572_v38 = vunpack.i.h.bf16 %v4203_v60  ;;  %v1246_v14 = vsel %vm419_vm8, %v1245_v51, %v2606_v30 }
 0x203   : > { %v4252_v46 = vsel %vm417_vm7, %v2060_v43, %v4173_v49  ;;  %v2546_v49 = vunpack.i.l.bf16 %v4169_v5  ;;  %v1449_v8 = vsel %vm413_vm5, %v1448_v15, %v2536_v9  ;;  %v2496_v5 = vunpack.i.l.bf16 %v4093_v55 }
 0x204   : > { %v4266_v13 = vpop.permute.xlu2 %2639  ;;  %v635_v55 = vsel %vm417_vm7, %v4197_v44, %v2491_v25  ;;  %v643_v15 = vsel %vm419_vm8, %v642_v48, %v2567_v1  ;;  %v2526_v21 = vunpack.i.l.bf16 %v4091_v31  ;;  %v1253_v44 = vsel %vm419_vm8, %v4233_v12, %v2607_v26 }
 0x205   : > { %v636_v11 = vsel %vm419_vm8, %v635_v55, %v2566_v7  ;;  %v644_v51 = vsel %vm421_vm9, %v643_v15, %v2497_v0  ;;  %v2080_v31 = vrot.slane %v4103_v34, 4  ;;  %v2592_v0 = vunpack.i.h.bf16 %v4201_v40 }
 0x206   : > { %v4258_v50 = vpop.permute.xlu0 %2039  ;;  %v637_v2 = vsel %vm421_vm9, %v636_v11, %v2496_v5  ;;  %v645_v12 = vsel %vm423_vm10, %v644_v51, %v2572_v38  ;;  %v2642_v7 = vunpack.i.h.bf16 %v4266_v13  ;;  %v2641_v26 = vunpack.i.l.bf16 %v4266_v13 }
 0x207   : > { %v2630_v27 = vpop.permute.xlu1 %2629  ;;  %v2612_v48 = vunpack.i.h.bf16 %v4239_v10 }
 0x208   : > { %v2632_v58 = vunpack.i.h.bf16 %v2630_v27  ;;  %v2631_v19 = vunpack.i.l.bf16 %v2630_v27  ;;  %v1247_v27 = vsel %vm421_vm9, %v1246_v14, %v2526_v21 }
 0x20a   : > { %v1457_v4 = vsel %vm415_vm6, %v1456_v57, %v2632_v58  ;;  %v1450_v29 = vsel %vm415_vm6, %v1449_v8, %v2631_v19  ;;  %v638_v58 = vsel %vm423_vm10, %v637_v2, %v2571_v6  ;;  %v2512_v19 = vunpack.i.h.bf16 %v4056_v42 }
 0x20b   : > { %v4271_v53 = vsel %vm417_vm7, %v1457_v4, %v2547_v41  ;;  %v4274_v63 = vsel %vm417_vm7, %v1450_v29, %v2546_v49  ;;  %v2591_v41 = vunpack.i.l.bf16 %v4201_v40  ;;  %v1254_v49 = vsel %vm421_vm9, %v1253_v44, %v2527_v37 }
 0x20c   : > { %v4310_v9 = vpop.permute.xlu2 %2654  ;;  %v2074_v4 = vrot.slane %v638_v58, 4  ;;  %v2075_v29 = vrot.slane %v645_v12, 4  ;;  %v850_v45 = vsel %vm421_vm9, %v4218_v54, %v2512_v19  ;;  %v1459_v6 = vsel %vm419_vm8, %v4271_v53, %v2642_v7 }
 0x20d   : > { %v2656_v19 = vunpack.i.l.bf16 %v4310_v9 }
 0x20e   : > { %v2635_v16 = vpop.permute.xlu0 %2634  ;;  %v4336_v40 = vsel %vm2096_vm11, %v4065_v22, %v2074_v4  ;;  %v2065_v22 = vsel %vm411_vm4, %v4021_v36, %v4205_v28  ;;  %v1452_v28 = vsel %vm419_vm8, %v4274_v63, %v2641_v26 }
 0x20f   : > { %v2637_v56 = vunpack.i.h.bf16 %v2635_v16  ;;  %v2636_v20 = vunpack.i.l.bf16 %v2635_v16  ;;  %v4285_v61 = vpop.permute.xlu1 %2047  ;;  %v2066_v38 = vsel %vm413_vm5, %v2065_v22, %v4165_v62  ;;  %v2611_v62 = vunpack.i.l.bf16 %v4239_v10 }
 0x210   : > { %v2067_v14 = vsel %vm415_vm6, %v2066_v38, %v4258_v50  ;;  %v1255_v50 = vsel %vm423_vm10, %v1254_v49, %v2612_v48  ;;  %v1643_v4 = vsel %vm421_vm9, %v4133_v17, %v2656_v19  ;;  %v2106_v17 = vld [vmem:[%s4421_s1 + $0x8] sm:$0xff] }
 0x211   : > { %v1863_v39 = vsel %vm419_vm8, %v1862_v47, %v2637_v56  ;;  %v1856_v43 = vsel %vm419_vm8, %v1855_v59, %v2636_v20  ;;  %v2511_v59 = vunpack.i.l.bf16 %v4056_v42  ;;  %v2068_v53 = vsel %vm417_vm7, %v2067_v14, %v4140_v35 }
 0x212   : > { %v4302_v60 = vsel %vm421_vm9, %v1856_v43, %v2551_v32  ;;  %v4307_v47 = vsel %vm421_vm9, %v1863_v39, %v2552_v24  ;;  %v851_v24 = vsel %vm423_vm10, %v850_v45, %v2592_v0  ;;  %v2692_v32 = vmov 0  }
 0x213   : > { %v843_v57 = vsel %vm421_vm9, %v4221_v52, %v2511_v59  ;;  %v2081_v52 = vrot.slane %v4106_v33, 4  ;;  %v2108_v33 = vld [vmem:[%s4422_s2 + $0x8] sm:$0xff]  ;;  %2668 = vset.pattern.permute.xlu1 %v2692_v32  ;;  %2669 = vset.pattern.permute.xlu2 %v2692_v32  ;;  %v1248_v15 = vsel %vm423_vm10, %v1247_v27, %v2611_v62  ;;  %v2069_v21 = vsel %vm419_vm8, %v2068_v53, %v4285_v61 }
 0x214   : > { %v844_v42 = vsel %vm423_vm10, %v843_v57, %v2591_v41  ;;  %2116 = vperm.xlu2 %2669, %v2108_v33   ;;  %2670 = vset.pattern.permute.xlu0 %v2692_v32  ;;  %v2657_v61 = vunpack.i.h.bf16 %v4310_v9 }
 0x215   : > { %v4330_v25 = vsel %vm2096_vm11, %v844_v42, %v2080_v31  ;;  %v4343_v54 = vsel %vm2096_vm11, %v851_v24, %v2081_v52 }
 0x216   : > { %v2020_v8 = vpop.permute.xlu0 %2019  ;;  %v1650_v0 = vsel %vm421_vm9, %v4137_v3, %v2657_v61  ;;  %v2105_v3 = vld [vmem:[%s4421_s1] sm:$0xff] }
 0x217   : > { %v2062_v30 = vsel %vm419_vm8, %v4252_v46, %v2020_v8  ;;  %v2645_v5 = vpop.permute.xlu1 %2644  ;;  %v4340_v46 = vsel %vm2096_vm11, %v4072_v23, %v2075_v29  ;;  %v2660_v23 = vpop.permute.xlu2 %2659 }
 0x218   : > { %v2063_v34 = vsel %vm421_vm9, %v2062_v30, %v4161_v18  ;;  %v2107_v18 = vld [vmem:[%s4422_s2] sm:$0xff]  ;;  %v2662_v55 = vunpack.i.h.bf16 %v2660_v23  ;;  %v2661_v36 = vunpack.i.l.bf16 %v2660_v23  ;;  %v2647_v27 = vunpack.i.h.bf16 %v2645_v5 }
 0x219   : > { %2111 = vperm.xlu1 %2668, %v2107_v18   ;;  %v2646_v12 = vunpack.i.l.bf16 %v2645_v5 }
 0x21a   : > { %v1865_v49 = vsel %vm423_vm10, %v4307_v47, %v2647_v27 }
 0x21b   : > { %v1858_v41 = vsel %vm423_vm10, %v4302_v60, %v2646_v12  ;;  %v2093_v30 = vrot.slane %v1865_v49, 4 }
 0x21c   : > { %v2092_v29 = vrot.slane %v1858_v41, 4 }
 0x21e   : > { %v2052_v1 = vpop.permute.xlu0 %2051 }
 0x21f   : > { %v2650_v16 = vpop.permute.xlu1 %2649  ;;  %v2070_v37 = vsel %vm421_vm9, %v2069_v21, %v2052_v1 }
 0x220   : > { %v2652_v56 = vunpack.i.h.bf16 %v2650_v16  ;;  %v2651_v20 = vunpack.i.l.bf16 %v2650_v16 }
 0x222   : > { %v1453_v13 = vsel %vm421_vm9, %v1452_v28, %v2651_v20  ;;  %v1460_v11 = vsel %vm421_vm9, %v1459_v6, %v2652_v56 }
 0x223   : > { %v1454_v39 = vsel %vm423_vm10, %v1453_v13, %v2661_v36  ;;  %v1461_v43 = vsel %vm423_vm10, %v1460_v11, %v2662_v55 }
 0x224   : > { %v2086_v2 = vrot.slane %v1454_v39, 4  ;;  %v2087_v63 = vrot.slane %v1461_v43, 4 }
 0x226   : > { %v2028_v44 = vpop.permute.xlu0 %2027  ;;  %v2101_v51 = vsel %vm2096_vm11, %v1248_v15, %v2086_v2  ;;  %v2102_v10 = vsel %vm2096_vm11, %v1255_v50, %v2087_v63 }
 0x227   : > { %v2056_v59 = vpop.permute.xlu1 %2055  ;;  %v2064_v58 = vsel %vm423_vm10, %v2063_v34, %v2028_v44 }
 0x228   : > { %2246 = vmatpush.msk.msra.mxu0 %vm2096_vm11, %v2064_v58  ;;  %2256 = vmatpush.msk.msra.mxu2 %vm2096_vm11, %v2064_v58  ;;  %v2071_v35 = vsel %vm423_vm10, %v2070_v37, %v2056_v59 }
 0x229   : > { %2249 = vmatpush.msk.msra.mxu1 %vm2096_vm11, %v2071_v35  ;;  %2261 = vmatpush.msk.msra.mxu3 %vm2096_vm11, %v2071_v35 }
 0x22e   : > { %v2665_v31 = vpop.permute.xlu0 %2664 }
 0x22f   : > { %v2667_v8 = vunpack.i.h.bf16 %v2665_v31  ;;  %v2666_v57 = vunpack.i.l.bf16 %v2665_v31 }
 0x231   : > { %v1644_v5 = vsel %vm423_vm10, %v1643_v4, %v2666_v57  ;;  %v1651_v9 = vsel %vm423_vm10, %v1650_v0, %v2667_v8 }
 0x232   : > { %v2103_v60 = vsel %vm2096_vm11, %v1644_v5, %v2092_v29  ;;  %v2104_v42 = vsel %vm2096_vm11, %v1651_v9, %v2093_v30 }
 0x233   : > { %2144 = vmatpush.msra.mxu0 %v2103_v60  ;;  %2257 = vmatpush.msra.mxu2 %v2103_v60 }
 0x234   : > { %2167 = vmatpush.msra.mxu1 %v2104_v42  ;;  %2262 = vmatpush.msra.mxu3 %v2104_v42 }
 0x235   : > { %2145 = vmatpush.msra.mxu0 %v2101_v51  ;;  %2258 = vmatpush.msra.mxu2 %v2101_v51 }
 0x236   : > { %2168 = vmatpush.msra.mxu1 %v2102_v10  ;;  %2263 = vmatpush.msra.mxu3 %v2102_v10 }
 0x237   : > { %2146 = vmatpush.msra.mxu0 %v4330_v25  ;;  %2259 = vmatpush.msra.mxu2 %v4330_v25 }
 0x238   : > { %2169 = vmatpush.msra.mxu1 %v4343_v54  ;;  %2264 = vmatpush.msra.mxu3 %v4343_v54 }
 0x239   : > { %2147 = vmatpush.msra.mxu0 %v4336_v40  ;;  %2260 = vmatpush.msra.mxu2 %v4336_v40 }
 0x23a   : > { %2170 = vmatpush.msra.mxu1 %v4340_v46  ;;  %2265 = vmatpush.msra.mxu3 %v4340_v46 }
 0x23b   : > { %2248 = vmatmul.msk.f32.vlgmr.msra.gmra.mxu2 %vm2119_vm12, %v2106_v17  ;;  %2251 = vmatmul.msk.f32.vlgmr.msra.gmra.mxu3 %vm2119_vm12, %v2106_v17 }
 0x23c   : > { %2247 = vmatmul.msk.f32.vlgmr.msra.gmra.mxu0 %vm2119_vm12, %v2105_v3  ;;  %2250 = vmatmul.msk.f32.vlgmr.msra.gmra.mxu1 %vm2119_vm12, %v2105_v3 }
 0x26e   : > { %v2117_v24 = vpop.permute.xlu2 %2116 }
 0x28b   : > { %v2112_v47 = vpop.permute.xlu1 %2111 }
 0x2b9   : > { %v2149_v45 = vpop.f32.mrf.mxu0  ;;  %v2172_v34 = vpop.f32.mrf.mxu1 }
 0x2ba   : > { %v2150_v25 = vadd.f32 %v2149_v45, %v2112_v47  ;;  %v2173_v52 = vadd.f32 %v2172_v34, %v2112_v47 }
 0x2bc   : > { %2178 = vst [vmem:[%s170_s14] sm:$0xff] %v2150_v25 }
 0x2bd   : > { %2179 = vst [vmem:[%s170_s14 + $0x8] sm:$0xff] %v2173_v52 }
 0x2be   : > { %v2152_v40 = vpop.f32.mrf.mxu2  ;;  %v2175_v54 = vpop.f32.mrf.mxu3 }
 0x2bf   : > { %v2153_v46 = vadd.f32 %v2152_v40, %v2117_v24  ;;  %v2176_v18 = vadd.f32 %v2175_v54, %v2117_v24 }
 0x2c1   : > { %2180 = vst [vmem:[%s170_s14 + $0x10] sm:$0xff] %v2153_v46 }
 0x2c2   : > { %2181 = vst [vmem:[%s170_s14 + $0x18] sm:$0xff] %v2176_v18 }
 0x2c3 PF: > { %s13_s12 = sadd.s32 1, %s2677_s12  }
 0x2c4   : > { %p10_p4 = scmp.ge.s32.totalorder %s13_s12, 4  }
 0x2c6   :  { %12 = sbr.rel (!%p10_p4) target bundleno = 1 (0x1), region = 62 }

</bundles_post_ra>
